<compile_context>
chip_gen: v7x
topology: tpu7x:2x2x1
jax: 0.10.0
libtpu: 0.0.40
codegen_flags: <defaults>
</compile_context>

<pallas_src>
import functools

import jax
import jax.numpy as jnp
from jax import lax
from jax.experimental import pallas as pl
from jax.experimental.pallas import tpu as pltpu


def _encoder_kernel(xp_ref, whh_ref, w_head_ref, b_head_ref,
                    hn_ref, cn_ref, head_ref,
                    *, seq_len, batch_pad, hidden_size):
    """Whole LSTM recurrence + heads in one invocation.

    xp_ref     : (4, T*B, H)  per-gate input projections (order i, f, g, o)
    whh_ref    : (4, H, H)    per-gate W_hh^T blocks      (order i, f, g, o)
    w_head_ref : (2, H)       fused [mu; sigma] head weights
    b_head_ref : (2, 1)       fused head biases
    hn_ref     : (B, H)       final hidden state
    cn_ref     : (B, H)       final cell state
    head_ref   : (2, T*B)     row 0 = mu, row 1 = softplus(sigma_pre)
    """
    T, B, H = seq_len, batch_pad, hidden_size

    # Per-gate recurrent weights, loaded once and reused across the unrolled
    # loop (Mosaic keeps them resident; no per-step re-fetch on the chain).
    w_i = whh_ref[0]
    w_f = whh_ref[1]
    w_g = whh_ref[2]
    w_o = whh_ref[3]

    h = jnp.zeros((B, H), jnp.float32)
    c = jnp.zeros((B, H), jnp.float32)
    hs = []

    for t in range(T):
        s = t * B  # sublane-aligned static offset (B == 8)
        # Four independent per-gate matmuls -> no lane slicing of a fused
        # (B, 4H) gate block; sigmoid only on i/f/o, tanh only on g.
        i_g = jax.nn.sigmoid(
            xp_ref[0, s:s + B, :]
            + jnp.dot(h, w_i, preferred_element_type=jnp.float32))
        f_g = jax.nn.sigmoid(
            xp_ref[1, s:s + B, :]
            + jnp.dot(h, w_f, preferred_element_type=jnp.float32))
        g_g = jnp.tanh(
            xp_ref[2, s:s + B, :]
            + jnp.dot(h, w_g, preferred_element_type=jnp.float32))
        o_g = jax.nn.sigmoid(
            xp_ref[3, s:s + B, :]
            + jnp.dot(h, w_o, preferred_element_type=jnp.float32))
        c = f_g * c + i_g * g_g
        h = o_g * jnp.tanh(c)
        hs.append(h)  # carried in registers; no per-step masked VMEM store

    hn_ref[...] = h
    cn_ref[...] = c

    # ---- Batched heads after the loop (dropout == identity in eval). ----
    # One (2, H) x (H, T*B) contraction -> lane-dense (2, T*B) slab.
    h_all = jnp.concatenate(hs, axis=0)                        # (T*B, H)
    head = jnp.dot(w_head_ref[...], h_all.T,
                   preferred_element_type=jnp.float32)          # (2, T*B)
    head = head + b_head_ref[...]

    mu = head[0:1, :]
    sig_pre = head[1:2, :]
    # Softplus with PyTorch defaults (beta=1, threshold=20), sigma row only.
    sig = jnp.where(sig_pre > 20.0, sig_pre,
                    jnp.log1p(jnp.exp(jnp.minimum(sig_pre, 20.0))))
    head_ref[...] = jnp.concatenate([mu, sig], axis=0)          # single store


def encoder_forward(x, params, hidden_size):
    """x: (seq_len, batch, covariate_size + 1) float32."""
    seq_len, batch, _ = x.shape
    H = hidden_size
    B_pad = 8  # one sublane group -> all (B, .) kernel accesses unmasked

    # ---- Wrapper-side prep (done once by XLA, off the critical path). ----
    # Pad batch with zero rows; row index in flattened layout = t*B_pad + b.
    x_pad = jnp.pad(x, ((0, 0), (0, B_pad - batch), (0, 0)))
    x2d = x_pad.reshape(seq_len * B_pad, -1)                    # (T*Bpad, D)

    # Hoisted input projection (keeps the 4/128 lane-sparse raw x out of the
    # kernel).  Gate order is PyTorch's native [i, f, g, o].
    b_gates = params["b_ih"] + params["b_hh"]                   # (4H,)
    xp = x2d @ params["w_ih"].T + b_gates                       # (T*Bpad, 4H)
    xp = xp.reshape(seq_len * B_pad, 4, H).transpose(1, 0, 2)   # (4, T*Bpad, H)

    # Per-gate W_hh^T blocks: (4H, H) -> (4, H, H), each block transposed.
    whh = params["w_hh"].reshape(4, H, H).transpose(0, 2, 1)    # (4, H, H)

    # Fused [mu; sigma] head.
    w_head = jnp.concatenate([params["w_mu"], params["w_sig"]], axis=0)  # (2, H)
    b_head = jnp.concatenate([params["b_mu"], params["b_sig"]]).reshape(2, 1)
    # TODO(synk): optional bf16 cast of whh / w_head for v6e/v7x MXU (needs a
    # looser numerical tolerance); kept f32 here.

    kernel = functools.partial(_encoder_kernel, seq_len=seq_len,
                               batch_pad=B_pad, hidden_size=H)

    out_shapes = (
        jax.ShapeDtypeStruct((B_pad, H), jnp.float32),              # h_n
        jax.ShapeDtypeStruct((B_pad, H), jnp.float32),              # c_n
        jax.ShapeDtypeStruct((2, seq_len * B_pad), jnp.float32),    # [mu; sigma]
    )

    vmem = pl.BlockSpec(memory_space=pltpu.MemorySpace.VMEM)

    h_n, c_n, head = pl.pallas_call(
        kernel,
        out_shape=out_shapes,
        in_specs=[vmem, vmem, vmem, vmem],
        out_specs=(vmem, vmem, vmem),
    )(xp, whh, w_head, b_head)

    # Strip batch padding and restore PyTorch output layout.
    h_n = h_n[:batch][None]                                      # (1, B, H)
    c_n = c_n[:batch][None]                                      # (1, B, H)
    head = head.reshape(2, seq_len, B_pad)[:, :, :batch]         # (2, T, B)
    mus = head[0][..., None]                                     # (T, B, 1)
    sigmas = head[1][..., None]                                  # (T, B, 1)
    return h_n, c_n, mus, sigmas


def _reference_forward(x, params, hidden_size):
    """Pure-JAX reference (matches PyTorch nn.LSTM + heads, eval mode)."""
    H = hidden_size
    w_ih, w_hh = params["w_ih"], params["w_hh"]
    b = params["b_ih"] + params["b_hh"]
    batch = x.shape[1]

    def step(carry, x_t):
        h, c = carry
        gates = x_t @ w_ih.T + h @ w_hh.T + b
        i = jax.nn.sigmoid(gates[:, 0 * H:1 * H])
        f = jax.nn.sigmoid(gates[:, 1 * H:2 * H])
        g = jnp.tanh(gates[:, 2 * H:3 * H])
        o = jax.nn.sigmoid(gates[:, 3 * H:4 * H])
        c = f * c + i * g
        h = o * jnp.tanh(c)
        return (h, c), h

    h0 = jnp.zeros((batch, H), jnp.float32)
    (h_n, c_n), outs = lax.scan(step, (h0, h0), x)
    mus = outs @ params["w_mu"].T + params["b_mu"]
    sig_pre = outs @ params["w_sig"].T + params["b_sig"]
    sigmas = jnp.where(sig_pre > 20.0, sig_pre, jnp.log1p(jnp.exp(sig_pre)))
    return h_n[None], c_n[None], mus, sigmas


def init_params(key, covariate_size, hidden_size):
    """Deterministic init, PyTorch-style U(-1/sqrt(H), 1/sqrt(H))."""
    D = covariate_size + 1
    H = hidden_size
    k = 1.0 / jnp.sqrt(jnp.float32(H))
    keys = jax.random.split(key, 8)
    u = lambda kk, shape: jax.random.uniform(kk, shape, jnp.float32, -k, k)
    return {
        "w_ih": u(keys[0], (4 * H, D)),
        "w_hh": u(keys[1], (4 * H, H)),
        "b_ih": u(keys[2], (4 * H,)),
        "b_hh": u(keys[3], (4 * H,)),
        "w_mu": u(keys[4], (1, H)),
        "b_mu": u(keys[5], (1,)),
        "w_sig": u(keys[6], (1, H)),
        "b_sig": u(keys[7], (1,)),
    }


if __name__ == "__main__":
    seq_len, batch, covariate_size, hidden_size = 8, 2, 3, 32
    key = jax.random.PRNGKey(0)
    k_x, k_p = jax.random.split(key)

    x = jax.random.normal(k_x, (seq_len, batch, covariate_size + 1), jnp.float32)
    params = init_params(k_p, covariate_size, hidden_size)

    h_n, c_n, mus, sigmas = encoder_forward(x, params, hidden_size)
    jax.block_until_ready((h_n, c_n, mus, sigmas))

    # Sanity-check against a pure-JAX reference.
    rh, rc, rm, rs = _reference_forward(x, params, hidden_size)
    assert h_n.shape == (1, batch, hidden_size)
    assert c_n.shape == (1, batch, hidden_size)
    assert mus.shape == (seq_len, batch, 1)
    assert sigmas.shape == (seq_len, batch, 1)
    assert jnp.allclose(h_n, rh, atol=1e-5), "h_n mismatch"
    assert jnp.allclose(c_n, rc, atol=1e-5), "c_n mismatch"
    assert jnp.allclose(mus, rm, atol=1e-5), "mus mismatch"
    assert jnp.allclose(sigmas, rs, atol=1e-5), "sigmas mismatch"

    print("KERNEL_OK")
</pallas_src>

<mosaic_0001>
module attributes {stable_mosaic.version = 11 : i64} {
  func.func @_encoder_kernel(%arg0: memref<4x64x32xf32, #tpu.memory_space<vmem>>, %arg1: memref<4x32x32xf32, #tpu.memory_space<vmem>>, %arg2: memref<2x32xf32, #tpu.memory_space<vmem>>, %arg3: memref<2x1xf32, #tpu.memory_space<vmem>>, %arg4: memref<8x32xf32, #tpu.memory_space<vmem>>, %arg5: memref<8x32xf32, #tpu.memory_space<vmem>>, %arg6: memref<2x64xf32, #tpu.memory_space<vmem>>) attributes {dimension_semantics = [], scalar_prefetch = 0 : i64, scratch_operands = 0 : i64, tpu.core_type = #tpu.core_type<tc>} {
    %c0 = arith.constant 0 : index
    %c0_0 = arith.constant 0 : index
    %c0_1 = arith.constant 0 : index
    %0 = vector.load %arg1[%c0, %c0_0, %c0_1] : memref<4x32x32xf32, #tpu.memory_space<vmem>>, vector<1x32x32xf32>
    %1 = vector.shape_cast %0 : vector<1x32x32xf32> to vector<32x32xf32>
    %c1 = arith.constant 1 : index
    %c0_2 = arith.constant 0 : index
    %c0_3 = arith.constant 0 : index
    %2 = vector.load %arg1[%c1, %c0_2, %c0_3] : memref<4x32x32xf32, #tpu.memory_space<vmem>>, vector<1x32x32xf32>
    %3 = vector.shape_cast %2 : vector<1x32x32xf32> to vector<32x32xf32>
    %c2 = arith.constant 2 : index
    %c0_4 = arith.constant 0 : index
    %c0_5 = arith.constant 0 : index
    %4 = vector.load %arg1[%c2, %c0_4, %c0_5] : memref<4x32x32xf32, #tpu.memory_space<vmem>>, vector<1x32x32xf32>
    %5 = vector.shape_cast %4 : vector<1x32x32xf32> to vector<32x32xf32>
    %c3 = arith.constant 3 : index
    %c0_6 = arith.constant 0 : index
    %c0_7 = arith.constant 0 : index
    %6 = vector.load %arg1[%c3, %c0_6, %c0_7] : memref<4x32x32xf32, #tpu.memory_space<vmem>>, vector<1x32x32xf32>
    %7 = vector.shape_cast %6 : vector<1x32x32xf32> to vector<32x32xf32>
    %cst = arith.constant 0.000000e+00 : f32
    %8 = vector.broadcast %cst : f32 to vector<8x32xf32>
    %cst_8 = arith.constant 0.000000e+00 : f32
    %9 = vector.broadcast %cst_8 : f32 to vector<8x32xf32>
    %c0_9 = arith.constant 0 : index
    %c0_10 = arith.constant 0 : index
    %c0_11 = arith.constant 0 : index
    %10 = vector.load %arg0[%c0_9, %c0_10, %c0_11] : memref<4x64x32xf32, #tpu.memory_space<vmem>>, vector<1x8x32xf32>
    %11 = vector.shape_cast %10 : vector<1x8x32xf32> to vector<8x32xf32>
    %cst_12 = arith.constant dense<0.000000e+00> : vector<8x32xf32>
    %12 = tpu.matmul %8, %1, %cst_12 {dimension_numbers = #tpu.dot_dimension_numbers<[1], [0], [0], [1], [0, 0, 1, 1], [], []>} : vector<8x32xf32>, vector<32x32xf32>, vector<8x32xf32> -> vector<8x32xf32>
    %13 = arith.addf %11, %12 : vector<8x32xf32>
    %14 = arith.negf %13 : vector<8x32xf32>
    %15 = math.exp %14 : vector<8x32xf32>
    %cst_13 = arith.constant 1.000000e+00 : f32
    %16 = vector.broadcast %cst_13 : f32 to vector<8x32xf32>
    %17 = arith.addf %16, %15 : vector<8x32xf32>
    %18 = arith.divf %16, %17 : vector<8x32xf32>
    %c1_14 = arith.constant 1 : index
    %c0_15 = arith.constant 0 : index
    %c0_16 = arith.constant 0 : index
    %19 = vector.load %arg0[%c1_14, %c0_15, %c0_16] : memref<4x64x32xf32, #tpu.memory_space<vmem>>, vector<1x8x32xf32>
    %20 = vector.shape_cast %19 : vector<1x8x32xf32> to vector<8x32xf32>
    %cst_17 = arith.constant dense<0.000000e+00> : vector<8x32xf32>
    %21 = tpu.matmul %8, %3, %cst_17 {dimension_numbers = #tpu.dot_dimension_numbers<[1], [0], [0], [1], [0, 0, 1, 1], [], []>} : vector<8x32xf32>, vector<32x32xf32>, vector<8x32xf32> -> vector<8x32xf32>
    %22 = arith.addf %20, %21 : vector<8x32xf32>
    %23 = arith.negf %22 : vector<8x32xf32>
    %24 = math.exp %23 : vector<8x32xf32>
    %cst_18 = arith.constant 1.000000e+00 : f32
    %25 = vector.broadcast %cst_18 : f32 to vector<8x32xf32>
    %26 = arith.addf %25, %24 : vector<8x32xf32>
    %27 = arith.divf %25, %26 : vector<8x32xf32>
    %c2_19 = arith.constant 2 : index
    %c0_20 = arith.constant 0 : index
    %c0_21 = arith.constant 0 : index
    %28 = vector.load %arg0[%c2_19, %c0_20, %c0_21] : memref<4x64x32xf32, #tpu.memory_space<vmem>>, vector<1x8x32xf32>
    %29 = vector.shape_cast %28 : vector<1x8x32xf32> to vector<8x32xf32>
    %cst_22 = arith.constant dense<0.000000e+00> : vector<8x32xf32>
    %30 = tpu.matmul %8, %5, %cst_22 {dimension_numbers = #tpu.dot_dimension_numbers<[1], [0], [0], [1], [0, 0, 1, 1], [], []>} : vector<8x32xf32>, vector<32x32xf32>, vector<8x32xf32> -> vector<8x32xf32>
    %31 = arith.addf %29, %30 : vector<8x32xf32>
    %32 = math.tanh %31 : vector<8x32xf32>
    %c3_23 = arith.constant 3 : index
    %c0_24 = arith.constant 0 : index
    %c0_25 = arith.constant 0 : index
    %33 = vector.load %arg0[%c3_23, %c0_24, %c0_25] : memref<4x64x32xf32, #tpu.memory_space<vmem>>, vector<1x8x32xf32>
    %34 = vector.shape_cast %33 : vector<1x8x32xf32> to vector<8x32xf32>
    %cst_26 = arith.constant dense<0.000000e+00> : vector<8x32xf32>
    %35 = tpu.matmul %8, %7, %cst_26 {dimension_numbers = #tpu.dot_dimension_numbers<[1], [0], [0], [1], [0, 0, 1, 1], [], []>} : vector<8x32xf32>, vector<32x32xf32>, vector<8x32xf32> -> vector<8x32xf32>
    %36 = arith.addf %34, %35 : vector<8x32xf32>
    %37 = arith.negf %36 : vector<8x32xf32>
    %38 = math.exp %37 : vector<8x32xf32>
    %cst_27 = arith.constant 1.000000e+00 : f32
    %39 = vector.broadcast %cst_27 : f32 to vector<8x32xf32>
    %40 = arith.addf %39, %38 : vector<8x32xf32>
    %41 = arith.divf %39, %40 : vector<8x32xf32>
    %42 = arith.mulf %27, %9 : vector<8x32xf32>
    %43 = arith.mulf %18, %32 : vector<8x32xf32>
    %44 = arith.addf %42, %43 : vector<8x32xf32>
    %45 = math.tanh %44 : vector<8x32xf32>
    %46 = arith.mulf %41, %45 : vector<8x32xf32>
    %c0_28 = arith.constant 0 : index
    %c8 = arith.constant 8 : index
    %c0_29 = arith.constant 0 : index
    %47 = vector.load %arg0[%c0_28, %c8, %c0_29] : memref<4x64x32xf32, #tpu.memory_space<vmem>>, vector<1x8x32xf32>
    %48 = vector.shape_cast %47 : vector<1x8x32xf32> to vector<8x32xf32>
    %cst_30 = arith.constant dense<0.000000e+00> : vector<8x32xf32>
    %49 = tpu.matmul %46, %1, %cst_30 {dimension_numbers = #tpu.dot_dimension_numbers<[1], [0], [0], [1], [0, 0, 1, 1], [], []>} : vector<8x32xf32>, vector<32x32xf32>, vector<8x32xf32> -> vector<8x32xf32>
    %50 = arith.addf %48, %49 : vector<8x32xf32>
    %51 = arith.negf %50 : vector<8x32xf32>
    %52 = math.exp %51 : vector<8x32xf32>
    %cst_31 = arith.constant 1.000000e+00 : f32
    %53 = vector.broadcast %cst_31 : f32 to vector<8x32xf32>
    %54 = arith.addf %53, %52 : vector<8x32xf32>
    %55 = arith.divf %53, %54 : vector<8x32xf32>
    %c1_32 = arith.constant 1 : index
    %c8_33 = arith.constant 8 : index
    %c0_34 = arith.constant 0 : index
    %56 = vector.load %arg0[%c1_32, %c8_33, %c0_34] : memref<4x64x32xf32, #tpu.memory_space<vmem>>, vector<1x8x32xf32>
    %57 = vector.shape_cast %56 : vector<1x8x32xf32> to vector<8x32xf32>
    %cst_35 = arith.constant dense<0.000000e+00> : vector<8x32xf32>
    %58 = tpu.matmul %46, %3, %cst_35 {dimension_numbers = #tpu.dot_dimension_numbers<[1], [0], [0], [1], [0, 0, 1, 1], [], []>} : vector<8x32xf32>, vector<32x32xf32>, vector<8x32xf32> -> vector<8x32xf32>
    %59 = arith.addf %57, %58 : vector<8x32xf32>
    %60 = arith.negf %59 : vector<8x32xf32>
    %61 = math.exp %60 : vector<8x32xf32>
    %cst_36 = arith.constant 1.000000e+00 : f32
    %62 = vector.broadcast %cst_36 : f32 to vector<8x32xf32>
    %63 = arith.addf %62, %61 : vector<8x32xf32>
    %64 = arith.divf %62, %63 : vector<8x32xf32>
    %c2_37 = arith.constant 2 : index
    %c8_38 = arith.constant 8 : index
    %c0_39 = arith.constant 0 : index
    %65 = vector.load %arg0[%c2_37, %c8_38, %c0_39] : memref<4x64x32xf32, #tpu.memory_space<vmem>>, vector<1x8x32xf32>
    %66 = vector.shape_cast %65 : vector<1x8x32xf32> to vector<8x32xf32>
    %cst_40 = arith.constant dense<0.000000e+00> : vector<8x32xf32>
    %67 = tpu.matmul %46, %5, %cst_40 {dimension_numbers = #tpu.dot_dimension_numbers<[1], [0], [0], [1], [0, 0, 1, 1], [], []>} : vector<8x32xf32>, vector<32x32xf32>, vector<8x32xf32> -> vector<8x32xf32>
    %68 = arith.addf %66, %67 : vector<8x32xf32>
    %69 = math.tanh %68 : vector<8x32xf32>
    %c3_41 = arith.constant 3 : index
    %c8_42 = arith.constant 8 : index
    %c0_43 = arith.constant 0 : index
    %70 = vector.load %arg0[%c3_41, %c8_42, %c0_43] : memref<4x64x32xf32, #tpu.memory_space<vmem>>, vector<1x8x32xf32>
    %71 = vector.shape_cast %70 : vector<1x8x32xf32> to vector<8x32xf32>
    %cst_44 = arith.constant dense<0.000000e+00> : vector<8x32xf32>
    %72 = tpu.matmul %46, %7, %cst_44 {dimension_numbers = #tpu.dot_dimension_numbers<[1], [0], [0], [1], [0, 0, 1, 1], [], []>} : vector<8x32xf32>, vector<32x32xf32>, vector<8x32xf32> -> vector<8x32xf32>
    %73 = arith.addf %71, %72 : vector<8x32xf32>
    %74 = arith.negf %73 : vector<8x32xf32>
    %75 = math.exp %74 : vector<8x32xf32>
    %cst_45 = arith.constant 1.000000e+00 : f32
    %76 = vector.broadcast %cst_45 : f32 to vector<8x32xf32>
    %77 = arith.addf %76, %75 : vector<8x32xf32>
    %78 = arith.divf %76, %77 : vector<8x32xf32>
    %79 = arith.mulf %64, %44 : vector<8x32xf32>
    %80 = arith.mulf %55, %69 : vector<8x32xf32>
    %81 = arith.addf %79, %80 : vector<8x32xf32>
    %82 = math.tanh %81 : vector<8x32xf32>
    %83 = arith.mulf %78, %82 : vector<8x32xf32>
    %c0_46 = arith.constant 0 : index
    %c16 = arith.constant 16 : index
    %c0_47 = arith.constant 0 : index
    %84 = vector.load %arg0[%c0_46, %c16, %c0_47] : memref<4x64x32xf32, #tpu.memory_space<vmem>>, vector<1x8x32xf32>
    %85 = vector.shape_cast %84 : vector<1x8x32xf32> to vector<8x32xf32>
    %cst_48 = arith.constant dense<0.000000e+00> : vector<8x32xf32>
    %86 = tpu.matmul %83, %1, %cst_48 {dimension_numbers = #tpu.dot_dimension_numbers<[1], [0], [0], [1], [0, 0, 1, 1], [], []>} : vector<8x32xf32>, vector<32x32xf32>, vector<8x32xf32> -> vector<8x32xf32>
    %87 = arith.addf %85, %86 : vector<8x32xf32>
    %88 = arith.negf %87 : vector<8x32xf32>
    %89 = math.exp %88 : vector<8x32xf32>
    %cst_49 = arith.constant 1.000000e+00 : f32
    %90 = vector.broadcast %cst_49 : f32 to vector<8x32xf32>
    %91 = arith.addf %90, %89 : vector<8x32xf32>
    %92 = arith.divf %90, %91 : vector<8x32xf32>
    %c1_50 = arith.constant 1 : index
    %c16_51 = arith.constant 16 : index
    %c0_52 = arith.constant 0 : index
    %93 = vector.load %arg0[%c1_50, %c16_51, %c0_52] : memref<4x64x32xf32, #tpu.memory_space<vmem>>, vector<1x8x32xf32>
    %94 = vector.shape_cast %93 : vector<1x8x32xf32> to vector<8x32xf32>
    %cst_53 = arith.constant dense<0.000000e+00> : vector<8x32xf32>
    %95 = tpu.matmul %83, %3, %cst_53 {dimension_numbers = #tpu.dot_dimension_numbers<[1], [0], [0], [1], [0, 0, 1, 1], [], []>} : vector<8x32xf32>, vector<32x32xf32>, vector<8x32xf32> -> vector<8x32xf32>
    %96 = arith.addf %94, %95 : vector<8x32xf32>
    %97 = arith.negf %96 : vector<8x32xf32>
    %98 = math.exp %97 : vector<8x32xf32>
    %cst_54 = arith.constant 1.000000e+00 : f32
    %99 = vector.broadcast %cst_54 : f32 to vector<8x32xf32>
    %100 = arith.addf %99, %98 : vector<8x32xf32>
    %101 = arith.divf %99, %100 : vector<8x32xf32>
    %c2_55 = arith.constant 2 : index
    %c16_56 = arith.constant 16 : index
    %c0_57 = arith.constant 0 : index
    %102 = vector.load %arg0[%c2_55, %c16_56, %c0_57] : memref<4x64x32xf32, #tpu.memory_space<vmem>>, vector<1x8x32xf32>
    %103 = vector.shape_cast %102 : vector<1x8x32xf32> to vector<8x32xf32>
    %cst_58 = arith.constant dense<0.000000e+00> : vector<8x32xf32>
    %104 = tpu.matmul %83, %5, %cst_58 {dimension_numbers = #tpu.dot_dimension_numbers<[1], [0], [0], [1], [0, 0, 1, 1], [], []>} : vector<8x32xf32>, vector<32x32xf32>, vector<8x32xf32> -> vector<8x32xf32>
    %105 = arith.addf %103, %104 : vector<8x32xf32>
    %106 = math.tanh %105 : vector<8x32xf32>
    %c3_59 = arith.constant 3 : index
    %c16_60 = arith.constant 16 : index
    %c0_61 = arith.constant 0 : index
    %107 = vector.load %arg0[%c3_59, %c16_60, %c0_61] : memref<4x64x32xf32, #tpu.memory_space<vmem>>, vector<1x8x32xf32>
    %108 = vector.shape_cast %107 : vector<1x8x32xf32> to vector<8x32xf32>
    %cst_62 = arith.constant dense<0.000000e+00> : vector<8x32xf32>
    %109 = tpu.matmul %83, %7, %cst_62 {dimension_numbers = #tpu.dot_dimension_numbers<[1], [0], [0], [1], [0, 0, 1, 1], [], []>} : vector<8x32xf32>, vector<32x32xf32>, vector<8x32xf32> -> vector<8x32xf32>
    %110 = arith.addf %108, %109 : vector<8x32xf32>
    %111 = arith.negf %110 : vector<8x32xf32>
    %112 = math.exp %111 : vector<8x32xf32>
    %cst_63 = arith.constant 1.000000e+00 : f32
    %113 = vector.broadcast %cst_63 : f32 to vector<8x32xf32>
    %114 = arith.addf %113, %112 : vector<8x32xf32>
    %115 = arith.divf %113, %114 : vector<8x32xf32>
    %116 = arith.mulf %101, %81 : vector<8x32xf32>
    %117 = arith.mulf %92, %106 : vector<8x32xf32>
    %118 = arith.addf %116, %117 : vector<8x32xf32>
    %119 = math.tanh %118 : vector<8x32xf32>
    %120 = arith.mulf %115, %119 : vector<8x32xf32>
    %c0_64 = arith.constant 0 : index
    %c24 = arith.constant 24 : index
    %c0_65 = arith.constant 0 : index
    %121 = vector.load %arg0[%c0_64, %c24, %c0_65] : memref<4x64x32xf32, #tpu.memory_space<vmem>>, vector<1x8x32xf32>
    %122 = vector.shape_cast %121 : vector<1x8x32xf32> to vector<8x32xf32>
    %cst_66 = arith.constant dense<0.000000e+00> : vector<8x32xf32>
    %123 = tpu.matmul %120, %1, %cst_66 {dimension_numbers = #tpu.dot_dimension_numbers<[1], [0], [0], [1], [0, 0, 1, 1], [], []>} : vector<8x32xf32>, vector<32x32xf32>, vector<8x32xf32> -> vector<8x32xf32>
    %124 = arith.addf %122, %123 : vector<8x32xf32>
    %125 = arith.negf %124 : vector<8x32xf32>
    %126 = math.exp %125 : vector<8x32xf32>
    %cst_67 = arith.constant 1.000000e+00 : f32
    %127 = vector.broadcast %cst_67 : f32 to vector<8x32xf32>
    %128 = arith.addf %127, %126 : vector<8x32xf32>
    %129 = arith.divf %127, %128 : vector<8x32xf32>
    %c1_68 = arith.constant 1 : index
    %c24_69 = arith.constant 24 : index
    %c0_70 = arith.constant 0 : index
    %130 = vector.load %arg0[%c1_68, %c24_69, %c0_70] : memref<4x64x32xf32, #tpu.memory_space<vmem>>, vector<1x8x32xf32>
    %131 = vector.shape_cast %130 : vector<1x8x32xf32> to vector<8x32xf32>
    %cst_71 = arith.constant dense<0.000000e+00> : vector<8x32xf32>
    %132 = tpu.matmul %120, %3, %cst_71 {dimension_numbers = #tpu.dot_dimension_numbers<[1], [0], [0], [1], [0, 0, 1, 1], [], []>} : vector<8x32xf32>, vector<32x32xf32>, vector<8x32xf32> -> vector<8x32xf32>
    %133 = arith.addf %131, %132 : vector<8x32xf32>
    %134 = arith.negf %133 : vector<8x32xf32>
    %135 = math.exp %134 : vector<8x32xf32>
    %cst_72 = arith.constant 1.000000e+00 : f32
    %136 = vector.broadcast %cst_72 : f32 to vector<8x32xf32>
    %137 = arith.addf %136, %135 : vector<8x32xf32>
    %138 = arith.divf %136, %137 : vector<8x32xf32>
    %c2_73 = arith.constant 2 : index
    %c24_74 = arith.constant 24 : index
    %c0_75 = arith.constant 0 : index
    %139 = vector.load %arg0[%c2_73, %c24_74, %c0_75] : memref<4x64x32xf32, #tpu.memory_space<vmem>>, vector<1x8x32xf32>
    %140 = vector.shape_cast %139 : vector<1x8x32xf32> to vector<8x32xf32>
    %cst_76 = arith.constant dense<0.000000e+00> : vector<8x32xf32>
    %141 = tpu.matmul %120, %5, %cst_76 {dimension_numbers = #tpu.dot_dimension_numbers<[1], [0], [0], [1], [0, 0, 1, 1], [], []>} : vector<8x32xf32>, vector<32x32xf32>, vector<8x32xf32> -> vector<8x32xf32>
    %142 = arith.addf %140, %141 : vector<8x32xf32>
    %143 = math.tanh %142 : vector<8x32xf32>
    %c3_77 = arith.constant 3 : index
    %c24_78 = arith.constant 24 : index
    %c0_79 = arith.constant 0 : index
    %144 = vector.load %arg0[%c3_77, %c24_78, %c0_79] : memref<4x64x32xf32, #tpu.memory_space<vmem>>, vector<1x8x32xf32>
    %145 = vector.shape_cast %144 : vector<1x8x32xf32> to vector<8x32xf32>
    %cst_80 = arith.constant dense<0.000000e+00> : vector<8x32xf32>
    %146 = tpu.matmul %120, %7, %cst_80 {dimension_numbers = #tpu.dot_dimension_numbers<[1], [0], [0], [1], [0, 0, 1, 1], [], []>} : vector<8x32xf32>, vector<32x32xf32>, vector<8x32xf32> -> vector<8x32xf32>
    %147 = arith.addf %145, %146 : vector<8x32xf32>
    %148 = arith.negf %147 : vector<8x32xf32>
    %149 = math.exp %148 : vector<8x32xf32>
    %cst_81 = arith.constant 1.000000e+00 : f32
    %150 = vector.broadcast %cst_81 : f32 to vector<8x32xf32>
    %151 = arith.addf %150, %149 : vector<8x32xf32>
    %152 = arith.divf %150, %151 : vector<8x32xf32>
    %153 = arith.mulf %138, %118 : vector<8x32xf32>
    %154 = arith.mulf %129, %143 : vector<8x32xf32>
    %155 = arith.addf %153, %154 : vector<8x32xf32>
    %156 = math.tanh %155 : vector<8x32xf32>
    %157 = arith.mulf %152, %156 : vector<8x32xf32>
    %c0_82 = arith.constant 0 : index
    %c32 = arith.constant 32 : index
    %c0_83 = arith.constant 0 : index
    %158 = vector.load %arg0[%c0_82, %c32, %c0_83] : memref<4x64x32xf32, #tpu.memory_space<vmem>>, vector<1x8x32xf32>
    %159 = vector.shape_cast %158 : vector<1x8x32xf32> to vector<8x32xf32>
    %cst_84 = arith.constant dense<0.000000e+00> : vector<8x32xf32>
    %160 = tpu.matmul %157, %1, %cst_84 {dimension_numbers = #tpu.dot_dimension_numbers<[1], [0], [0], [1], [0, 0, 1, 1], [], []>} : vector<8x32xf32>, vector<32x32xf32>, vector<8x32xf32> -> vector<8x32xf32>
    %161 = arith.addf %159, %160 : vector<8x32xf32>
    %162 = arith.negf %161 : vector<8x32xf32>
    %163 = math.exp %162 : vector<8x32xf32>
    %cst_85 = arith.constant 1.000000e+00 : f32
    %164 = vector.broadcast %cst_85 : f32 to vector<8x32xf32>
    %165 = arith.addf %164, %163 : vector<8x32xf32>
    %166 = arith.divf %164, %165 : vector<8x32xf32>
    %c1_86 = arith.constant 1 : index
    %c32_87 = arith.constant 32 : index
    %c0_88 = arith.constant 0 : index
    %167 = vector.load %arg0[%c1_86, %c32_87, %c0_88] : memref<4x64x32xf32, #tpu.memory_space<vmem>>, vector<1x8x32xf32>
    %168 = vector.shape_cast %167 : vector<1x8x32xf32> to vector<8x32xf32>
    %cst_89 = arith.constant dense<0.000000e+00> : vector<8x32xf32>
    %169 = tpu.matmul %157, %3, %cst_89 {dimension_numbers = #tpu.dot_dimension_numbers<[1], [0], [0], [1], [0, 0, 1, 1], [], []>} : vector<8x32xf32>, vector<32x32xf32>, vector<8x32xf32> -> vector<8x32xf32>
    %170 = arith.addf %168, %169 : vector<8x32xf32>
    %171 = arith.negf %170 : vector<8x32xf32>
    %172 = math.exp %171 : vector<8x32xf32>
    %cst_90 = arith.constant 1.000000e+00 : f32
    %173 = vector.broadcast %cst_90 : f32 to vector<8x32xf32>
    %174 = arith.addf %173, %172 : vector<8x32xf32>
    %175 = arith.divf %173, %174 : vector<8x32xf32>
    %c2_91 = arith.constant 2 : index
    %c32_92 = arith.constant 32 : index
    %c0_93 = arith.constant 0 : index
    %176 = vector.load %arg0[%c2_91, %c32_92, %c0_93] : memref<4x64x32xf32, #tpu.memory_space<vmem>>, vector<1x8x32xf32>
    %177 = vector.shape_cast %176 : vector<1x8x32xf32> to vector<8x32xf32>
    %cst_94 = arith.constant dense<0.000000e+00> : vector<8x32xf32>
    %178 = tpu.matmul %157, %5, %cst_94 {dimension_numbers = #tpu.dot_dimension_numbers<[1], [0], [0], [1], [0, 0, 1, 1], [], []>} : vector<8x32xf32>, vector<32x32xf32>, vector<8x32xf32> -> vector<8x32xf32>
    %179 = arith.addf %177, %178 : vector<8x32xf32>
    %180 = math.tanh %179 : vector<8x32xf32>
    %c3_95 = arith.constant 3 : index
    %c32_96 = arith.constant 32 : index
    %c0_97 = arith.constant 0 : index
    %181 = vector.load %arg0[%c3_95, %c32_96, %c0_97] : memref<4x64x32xf32, #tpu.memory_space<vmem>>, vector<1x8x32xf32>
    %182 = vector.shape_cast %181 : vector<1x8x32xf32> to vector<8x32xf32>
    %cst_98 = arith.constant dense<0.000000e+00> : vector<8x32xf32>
    %183 = tpu.matmul %157, %7, %cst_98 {dimension_numbers = #tpu.dot_dimension_numbers<[1], [0], [0], [1], [0, 0, 1, 1], [], []>} : vector<8x32xf32>, vector<32x32xf32>, vector<8x32xf32> -> vector<8x32xf32>
    %184 = arith.addf %182, %183 : vector<8x32xf32>
    %185 = arith.negf %184 : vector<8x32xf32>
    %186 = math.exp %185 : vector<8x32xf32>
    %cst_99 = arith.constant 1.000000e+00 : f32
    %187 = vector.broadcast %cst_99 : f32 to vector<8x32xf32>
    %188 = arith.addf %187, %186 : vector<8x32xf32>
    %189 = arith.divf %187, %188 : vector<8x32xf32>
    %190 = arith.mulf %175, %155 : vector<8x32xf32>
    %191 = arith.mulf %166, %180 : vector<8x32xf32>
    %192 = arith.addf %190, %191 : vector<8x32xf32>
    %193 = math.tanh %192 : vector<8x32xf32>
    %194 = arith.mulf %189, %193 : vector<8x32xf32>
    %c0_100 = arith.constant 0 : index
    %c40 = arith.constant 40 : index
    %c0_101 = arith.constant 0 : index
    %195 = vector.load %arg0[%c0_100, %c40, %c0_101] : memref<4x64x32xf32, #tpu.memory_space<vmem>>, vector<1x8x32xf32>
    %196 = vector.shape_cast %195 : vector<1x8x32xf32> to vector<8x32xf32>
    %cst_102 = arith.constant dense<0.000000e+00> : vector<8x32xf32>
    %197 = tpu.matmul %194, %1, %cst_102 {dimension_numbers = #tpu.dot_dimension_numbers<[1], [0], [0], [1], [0, 0, 1, 1], [], []>} : vector<8x32xf32>, vector<32x32xf32>, vector<8x32xf32> -> vector<8x32xf32>
    %198 = arith.addf %196, %197 : vector<8x32xf32>
    %199 = arith.negf %198 : vector<8x32xf32>
    %200 = math.exp %199 : vector<8x32xf32>
    %cst_103 = arith.constant 1.000000e+00 : f32
    %201 = vector.broadcast %cst_103 : f32 to vector<8x32xf32>
    %202 = arith.addf %201, %200 : vector<8x32xf32>
    %203 = arith.divf %201, %202 : vector<8x32xf32>
    %c1_104 = arith.constant 1 : index
    %c40_105 = arith.constant 40 : index
    %c0_106 = arith.constant 0 : index
    %204 = vector.load %arg0[%c1_104, %c40_105, %c0_106] : memref<4x64x32xf32, #tpu.memory_space<vmem>>, vector<1x8x32xf32>
    %205 = vector.shape_cast %204 : vector<1x8x32xf32> to vector<8x32xf32>
    %cst_107 = arith.constant dense<0.000000e+00> : vector<8x32xf32>
    %206 = tpu.matmul %194, %3, %cst_107 {dimension_numbers = #tpu.dot_dimension_numbers<[1], [0], [0], [1], [0, 0, 1, 1], [], []>} : vector<8x32xf32>, vector<32x32xf32>, vector<8x32xf32> -> vector<8x32xf32>
    %207 = arith.addf %205, %206 : vector<8x32xf32>
    %208 = arith.negf %207 : vector<8x32xf32>
    %209 = math.exp %208 : vector<8x32xf32>
    %cst_108 = arith.constant 1.000000e+00 : f32
    %210 = vector.broadcast %cst_108 : f32 to vector<8x32xf32>
    %211 = arith.addf %210, %209 : vector<8x32xf32>
    %212 = arith.divf %210, %211 : vector<8x32xf32>
    %c2_109 = arith.constant 2 : index
    %c40_110 = arith.constant 40 : index
    %c0_111 = arith.constant 0 : index
    %213 = vector.load %arg0[%c2_109, %c40_110, %c0_111] : memref<4x64x32xf32, #tpu.memory_space<vmem>>, vector<1x8x32xf32>
    %214 = vector.shape_cast %213 : vector<1x8x32xf32> to vector<8x32xf32>
    %cst_112 = arith.constant dense<0.000000e+00> : vector<8x32xf32>
    %215 = tpu.matmul %194, %5, %cst_112 {dimension_numbers = #tpu.dot_dimension_numbers<[1], [0], [0], [1], [0, 0, 1, 1], [], []>} : vector<8x32xf32>, vector<32x32xf32>, vector<8x32xf32> -> vector<8x32xf32>
    %216 = arith.addf %214, %215 : vector<8x32xf32>
    %217 = math.tanh %216 : vector<8x32xf32>
    %c3_113 = arith.constant 3 : index
    %c40_114 = arith.constant 40 : index
    %c0_115 = arith.constant 0 : index
    %218 = vector.load %arg0[%c3_113, %c40_114, %c0_115] : memref<4x64x32xf32, #tpu.memory_space<vmem>>, vector<1x8x32xf32>
    %219 = vector.shape_cast %218 : vector<1x8x32xf32> to vector<8x32xf32>
    %cst_116 = arith.constant dense<0.000000e+00> : vector<8x32xf32>
    %220 = tpu.matmul %194, %7, %cst_116 {dimension_numbers = #tpu.dot_dimension_numbers<[1], [0], [0], [1], [0, 0, 1, 1], [], []>} : vector<8x32xf32>, vector<32x32xf32>, vector<8x32xf32> -> vector<8x32xf32>
    %221 = arith.addf %219, %220 : vector<8x32xf32>
    %222 = arith.negf %221 : vector<8x32xf32>
    %223 = math.exp %222 : vector<8x32xf32>
    %cst_117 = arith.constant 1.000000e+00 : f32
    %224 = vector.broadcast %cst_117 : f32 to vector<8x32xf32>
    %225 = arith.addf %224, %223 : vector<8x32xf32>
    %226 = arith.divf %224, %225 : vector<8x32xf32>
    %227 = arith.mulf %212, %192 : vector<8x32xf32>
    %228 = arith.mulf %203, %217 : vector<8x32xf32>
    %229 = arith.addf %227, %228 : vector<8x32xf32>
    %230 = math.tanh %229 : vector<8x32xf32>
    %231 = arith.mulf %226, %230 : vector<8x32xf32>
    %c0_118 = arith.constant 0 : index
    %c48 = arith.constant 48 : index
    %c0_119 = arith.constant 0 : index
    %232 = vector.load %arg0[%c0_118, %c48, %c0_119] : memref<4x64x32xf32, #tpu.memory_space<vmem>>, vector<1x8x32xf32>
    %233 = vector.shape_cast %232 : vector<1x8x32xf32> to vector<8x32xf32>
    %cst_120 = arith.constant dense<0.000000e+00> : vector<8x32xf32>
    %234 = tpu.matmul %231, %1, %cst_120 {dimension_numbers = #tpu.dot_dimension_numbers<[1], [0], [0], [1], [0, 0, 1, 1], [], []>} : vector<8x32xf32>, vector<32x32xf32>, vector<8x32xf32> -> vector<8x32xf32>
    %235 = arith.addf %233, %234 : vector<8x32xf32>
    %236 = arith.negf %235 : vector<8x32xf32>
    %237 = math.exp %236 : vector<8x32xf32>
    %cst_121 = arith.constant 1.000000e+00 : f32
    %238 = vector.broadcast %cst_121 : f32 to vector<8x32xf32>
    %239 = arith.addf %238, %237 : vector<8x32xf32>
    %240 = arith.divf %238, %239 : vector<8x32xf32>
    %c1_122 = arith.constant 1 : index
    %c48_123 = arith.constant 48 : index
    %c0_124 = arith.constant 0 : index
    %241 = vector.load %arg0[%c1_122, %c48_123, %c0_124] : memref<4x64x32xf32, #tpu.memory_space<vmem>>, vector<1x8x32xf32>
    %242 = vector.shape_cast %241 : vector<1x8x32xf32> to vector<8x32xf32>
    %cst_125 = arith.constant dense<0.000000e+00> : vector<8x32xf32>
    %243 = tpu.matmul %231, %3, %cst_125 {dimension_numbers = #tpu.dot_dimension_numbers<[1], [0], [0], [1], [0, 0, 1, 1], [], []>} : vector<8x32xf32>, vector<32x32xf32>, vector<8x32xf32> -> vector<8x32xf32>
    %244 = arith.addf %242, %243 : vector<8x32xf32>
    %245 = arith.negf %244 : vector<8x32xf32>
    %246 = math.exp %245 : vector<8x32xf32>
    %cst_126 = arith.constant 1.000000e+00 : f32
    %247 = vector.broadcast %cst_126 : f32 to vector<8x32xf32>
    %248 = arith.addf %247, %246 : vector<8x32xf32>
    %249 = arith.divf %247, %248 : vector<8x32xf32>
    %c2_127 = arith.constant 2 : index
    %c48_128 = arith.constant 48 : index
    %c0_129 = arith.constant 0 : index
    %250 = vector.load %arg0[%c2_127, %c48_128, %c0_129] : memref<4x64x32xf32, #tpu.memory_space<vmem>>, vector<1x8x32xf32>
    %251 = vector.shape_cast %250 : vector<1x8x32xf32> to vector<8x32xf32>
    %cst_130 = arith.constant dense<0.000000e+00> : vector<8x32xf32>
    %252 = tpu.matmul %231, %5, %cst_130 {dimension_numbers = #tpu.dot_dimension_numbers<[1], [0], [0], [1], [0, 0, 1, 1], [], []>} : vector<8x32xf32>, vector<32x32xf32>, vector<8x32xf32> -> vector<8x32xf32>
    %253 = arith.addf %251, %252 : vector<8x32xf32>
    %254 = math.tanh %253 : vector<8x32xf32>
    %c3_131 = arith.constant 3 : index
    %c48_132 = arith.constant 48 : index
    %c0_133 = arith.constant 0 : index
    %255 = vector.load %arg0[%c3_131, %c48_132, %c0_133] : memref<4x64x32xf32, #tpu.memory_space<vmem>>, vector<1x8x32xf32>
    %256 = vector.shape_cast %255 : vector<1x8x32xf32> to vector<8x32xf32>
    %cst_134 = arith.constant dense<0.000000e+00> : vector<8x32xf32>
    %257 = tpu.matmul %231, %7, %cst_134 {dimension_numbers = #tpu.dot_dimension_numbers<[1], [0], [0], [1], [0, 0, 1, 1], [], []>} : vector<8x32xf32>, vector<32x32xf32>, vector<8x32xf32> -> vector<8x32xf32>
    %258 = arith.addf %256, %257 : vector<8x32xf32>
    %259 = arith.negf %258 : vector<8x32xf32>
    %260 = math.exp %259 : vector<8x32xf32>
    %cst_135 = arith.constant 1.000000e+00 : f32
    %261 = vector.broadcast %cst_135 : f32 to vector<8x32xf32>
    %262 = arith.addf %261, %260 : vector<8x32xf32>
    %263 = arith.divf %261, %262 : vector<8x32xf32>
    %264 = arith.mulf %249, %229 : vector<8x32xf32>
    %265 = arith.mulf %240, %254 : vector<8x32xf32>
    %266 = arith.addf %264, %265 : vector<8x32xf32>
    %267 = math.tanh %266 : vector<8x32xf32>
    %268 = arith.mulf %263, %267 : vector<8x32xf32>
    %c0_136 = arith.constant 0 : index
    %c56 = arith.constant 56 : index
    %c0_137 = arith.constant 0 : index
    %269 = vector.load %arg0[%c0_136, %c56, %c0_137] : memref<4x64x32xf32, #tpu.memory_space<vmem>>, vector<1x8x32xf32>
    %270 = vector.shape_cast %269 : vector<1x8x32xf32> to vector<8x32xf32>
    %cst_138 = arith.constant dense<0.000000e+00> : vector<8x32xf32>
    %271 = tpu.matmul %268, %1, %cst_138 {dimension_numbers = #tpu.dot_dimension_numbers<[1], [0], [0], [1], [0, 0, 1, 1], [], []>} : vector<8x32xf32>, vector<32x32xf32>, vector<8x32xf32> -> vector<8x32xf32>
    %272 = arith.addf %270, %271 : vector<8x32xf32>
    %273 = arith.negf %272 : vector<8x32xf32>
    %274 = math.exp %273 : vector<8x32xf32>
    %cst_139 = arith.constant 1.000000e+00 : f32
    %275 = vector.broadcast %cst_139 : f32 to vector<8x32xf32>
    %276 = arith.addf %275, %274 : vector<8x32xf32>
    %277 = arith.divf %275, %276 : vector<8x32xf32>
    %c1_140 = arith.constant 1 : index
    %c56_141 = arith.constant 56 : index
    %c0_142 = arith.constant 0 : index
    %278 = vector.load %arg0[%c1_140, %c56_141, %c0_142] : memref<4x64x32xf32, #tpu.memory_space<vmem>>, vector<1x8x32xf32>
    %279 = vector.shape_cast %278 : vector<1x8x32xf32> to vector<8x32xf32>
    %cst_143 = arith.constant dense<0.000000e+00> : vector<8x32xf32>
    %280 = tpu.matmul %268, %3, %cst_143 {dimension_numbers = #tpu.dot_dimension_numbers<[1], [0], [0], [1], [0, 0, 1, 1], [], []>} : vector<8x32xf32>, vector<32x32xf32>, vector<8x32xf32> -> vector<8x32xf32>
    %281 = arith.addf %279, %280 : vector<8x32xf32>
    %282 = arith.negf %281 : vector<8x32xf32>
    %283 = math.exp %282 : vector<8x32xf32>
    %cst_144 = arith.constant 1.000000e+00 : f32
    %284 = vector.broadcast %cst_144 : f32 to vector<8x32xf32>
    %285 = arith.addf %284, %283 : vector<8x32xf32>
    %286 = arith.divf %284, %285 : vector<8x32xf32>
    %c2_145 = arith.constant 2 : index
    %c56_146 = arith.constant 56 : index
    %c0_147 = arith.constant 0 : index
    %287 = vector.load %arg0[%c2_145, %c56_146, %c0_147] : memref<4x64x32xf32, #tpu.memory_space<vmem>>, vector<1x8x32xf32>
    %288 = vector.shape_cast %287 : vector<1x8x32xf32> to vector<8x32xf32>
    %cst_148 = arith.constant dense<0.000000e+00> : vector<8x32xf32>
    %289 = tpu.matmul %268, %5, %cst_148 {dimension_numbers = #tpu.dot_dimension_numbers<[1], [0], [0], [1], [0, 0, 1, 1], [], []>} : vector<8x32xf32>, vector<32x32xf32>, vector<8x32xf32> -> vector<8x32xf32>
    %290 = arith.addf %288, %289 : vector<8x32xf32>
    %291 = math.tanh %290 : vector<8x32xf32>
    %c3_149 = arith.constant 3 : index
    %c56_150 = arith.constant 56 : index
    %c0_151 = arith.constant 0 : index
    %292 = vector.load %arg0[%c3_149, %c56_150, %c0_151] : memref<4x64x32xf32, #tpu.memory_space<vmem>>, vector<1x8x32xf32>
    %293 = vector.shape_cast %292 : vector<1x8x32xf32> to vector<8x32xf32>
    %cst_152 = arith.constant dense<0.000000e+00> : vector<8x32xf32>
    %294 = tpu.matmul %268, %7, %cst_152 {dimension_numbers = #tpu.dot_dimension_numbers<[1], [0], [0], [1], [0, 0, 1, 1], [], []>} : vector<8x32xf32>, vector<32x32xf32>, vector<8x32xf32> -> vector<8x32xf32>
    %295 = arith.addf %293, %294 : vector<8x32xf32>
    %296 = arith.negf %295 : vector<8x32xf32>
    %297 = math.exp %296 : vector<8x32xf32>
    %cst_153 = arith.constant 1.000000e+00 : f32
    %298 = vector.broadcast %cst_153 : f32 to vector<8x32xf32>
    %299 = arith.addf %298, %297 : vector<8x32xf32>
    %300 = arith.divf %298, %299 : vector<8x32xf32>
    %301 = arith.mulf %286, %266 : vector<8x32xf32>
    %302 = arith.mulf %277, %291 : vector<8x32xf32>
    %303 = arith.addf %301, %302 : vector<8x32xf32>
    %304 = math.tanh %303 : vector<8x32xf32>
    %305 = arith.mulf %300, %304 : vector<8x32xf32>
    %c0_154 = arith.constant 0 : index
    %c0_155 = arith.constant 0 : index
    %306 = vector.load %arg4[%c0_154, %c0_155] : memref<8x32xf32, #tpu.memory_space<vmem>>, vector<8x32xf32>
    tpu.vector_store %arg4[%c0_154, %c0_155], %305 {strides = array<i32>} : memref<8x32xf32, #tpu.memory_space<vmem>>, vector<8x32xf32>,
    %c0_156 = arith.constant 0 : index
    %c0_157 = arith.constant 0 : index
    %307 = vector.load %arg5[%c0_156, %c0_157] : memref<8x32xf32, #tpu.memory_space<vmem>>, vector<8x32xf32>
    tpu.vector_store %arg5[%c0_156, %c0_157], %303 {strides = array<i32>} : memref<8x32xf32, #tpu.memory_space<vmem>>, vector<8x32xf32>,
    %308 = tpu.concatenate %46, %83, %120, %157, %194, %231, %268, %305 in 0 : vector<8x32xf32>, vector<8x32xf32>, vector<8x32xf32>, vector<8x32xf32>, vector<8x32xf32>, vector<8x32xf32>, vector<8x32xf32>, vector<8x32xf32> -> vector<64x32xf32>
    %c0_158 = arith.constant 0 : index
    %c0_159 = arith.constant 0 : index
    %309 = vector.load %arg2[%c0_158, %c0_159] : memref<2x32xf32, #tpu.memory_space<vmem>>, vector<2x32xf32>
    %310 = tpu.transpose %308, [1, 0] : vector<64x32xf32> -> vector<32x64xf32>
    %cst_160 = arith.constant dense<0.000000e+00> : vector<2x64xf32>
    %311 = tpu.matmul %309, %310, %cst_160 {dimension_numbers = #tpu.dot_dimension_numbers<[1], [0], [0], [1], [0, 0, 1, 1], [], []>} : vector<2x32xf32>, vector<32x64xf32>, vector<2x64xf32> -> vector<2x64xf32>
    %c0_161 = arith.constant 0 : index
    %c0_162 = arith.constant 0 : index
    %312 = vector.load %arg3[%c0_161, %c0_162] : memref<2x1xf32, #tpu.memory_space<vmem>>, vector<2x1xf32>
    %313 = vector.broadcast %312 : vector<2x1xf32> to vector<2x64xf32>
    %314 = arith.addf %311, %313 : vector<2x64xf32>
    %315 = vector.extract_strided_slice %314 {offsets = [0, 0], sizes = [1, 64], strides = [1, 1]} : vector<2x64xf32> to vector<1x64xf32>
    %316 = vector.extract_strided_slice %314 {offsets = [1, 0], sizes = [1, 64], strides = [1, 1]} : vector<2x64xf32> to vector<1x64xf32>
    %cst_163 = arith.constant 2.000000e+01 : f32
    %317 = vector.broadcast %cst_163 : f32 to vector<1x64xf32>
    %318 = arith.cmpf ogt, %316, %317 : vector<1x64xf32>
    %cst_164 = arith.constant 2.000000e+01 : f32
    %319 = vector.broadcast %cst_164 : f32 to vector<1x64xf32>
    %320 = arith.minimumf %316, %319 : vector<1x64xf32>
    %321 = math.exp %320 : vector<1x64xf32>
    %322 = math.log1p %321 : vector<1x64xf32>
    %323 = arith.select %318, %316, %322 : vector<1x64xi1>, vector<1x64xf32>
    %324 = tpu.concatenate %315, %323 in 0 : vector<1x64xf32>, vector<1x64xf32> -> vector<2x64xf32>
    %c0_165 = arith.constant 0 : index
    %c0_166 = arith.constant 0 : index
    %325 = vector.load %arg6[%c0_165, %c0_166] : memref<2x64xf32, #tpu.memory_space<vmem>>, vector<2x64xf32>
    tpu.vector_store %arg6[%c0_165, %c0_166], %324 {strides = array<i32>} : memref<2x64xf32, #tpu.memory_space<vmem>>, vector<2x64xf32>,
    return
  }
}

</mosaic_0001>

<bundles_post_ra>
// kernel: tpu_custom_call.1
= control target key start
LH: loop header
LB: loop body
LE: loop exit
PB: predicated region body
PF: predicated region fallthrough
CT: control target
= control target key end

     0   :  { %12 = vsyncpa [#allocation3], 0  ;;  %v3764_v3 = vmov 0.0|0.0   ;;  %vm3765_vm0 = vmmov 0   ;;  %v3766_v6 = vmov 0.0   ;;  %s4332_s0 = inlined_call_operand.vmem [shape: f32[4,64,32], index: 0, kind: input, shape index: {}]   ;;  %s4333_s1 = inlined_call_operand.vmem [shape: f32[4,32,32], index: 1, kind: input, shape index: {}]   ;;  %s4334_s2 = inlined_call_operand.vmem [shape: f32[2,32], index: 2, kind: input, shape index: {}]   ;;  %s4335_s3 = inlined_call_operand.vmem [shape: f32[2,1], index: 3, kind: input, shape index: {}]   ;;  %s4336_s4 = inlined_call_operand.hbm [shape: f32[8,32], index: 4, kind: output, shape index: {0}]   ;;  %s4337_s5 = inlined_call_operand.hbm [shape: f32[8,32], index: 5, kind: output, shape index: {1}]   ;;  %s4338_s6 = inlined_call_operand.hbm [shape: f32[2,64], index: 6, kind: output, shape index: {2}]  }
   0x1   :  { %v22_v0 = vld [vmem:[%s4333_s1] sm:$0xff]  ;;  %v23_v1 = vld [vmem:[%s4333_s1 + $0x8] sm:$0xff]  ;;  %v24_v2 = vld [vmem:[%s4333_s1 + $0x10] sm:$0xff]  ;;  %3346 = vmatprep.subr.bf16.mxu1 %v3764_v3  ;;  %2983 = vmatprep.mubr.msk.f32.mxu1 %vm3765_vm0, %v3766_v6 }
   0x2   :  { %v3816_v4 = vpack.c.bf16 %v23_v1, %v22_v0  ;;  %v25_v5 = vld [vmem:[%s4333_s1 + $0x18] sm:$0xff]  ;;  %3370 = vmatprep.subr.bf16.mxu0 %v3764_v3  ;;  %3027 = vmatprep.mubr.msk.f32.mxu0 %vm3765_vm0, %v3766_v6  ;;  %v2709_v8 = vld [vmem:[%s4333_s1 + $0x20] sm:$0xff]  ;;  %v2710_v9 = vld [vmem:[%s4333_s1 + $0x28] sm:$0xff] }
   0x3   :  { %v3827_v7 = vpack.c.bf16 %v25_v5, %v24_v2 }
   0x4   :  { %3348 = vmatpush3.bf16.msra.mxu1 %v3816_v4  ;;  %3372 = vmatpush3.bf16.msra.mxu0 %v3816_v4 }
   0x5   :  { %3349 = vmatprep.subr.bf16.mxu1 %v3764_v3  ;;  %3373 = vmatprep.subr.bf16.mxu0 %v3764_v3 }
   0x6   :  { %13 = vsyncpa [#allocation5], 0  ;;  %v3839_v10 = vpack.c.bf16 %v2710_v9, %v2709_v8  ;;  %v2711_v11 = vld [vmem:[%s4333_s1 + $0x30] sm:$0xff]  ;;  %v2712_v12 = vld [vmem:[%s4333_s1 + $0x38] sm:$0xff]  ;;  %vm42_vm1 = vcmask 261120   ;;  %s3768_s20 = smov [#allocation4]  }
   0x7   :  { %v3852_v13 = vpack.c.bf16 %v2712_v12, %v2711_v11  ;;  %v2713_v14 = vld [vmem:[%s4333_s1 + $0x40] sm:$0xff]  ;;  %v2714_v15 = vld [vmem:[%s4333_s1 + $0x48] sm:$0xff]  ;;  %v2715_v17 = vld [vmem:[%s4333_s1 + $0x50] sm:$0xff]  ;;  %s2684_s21 = sshll.u32 %s3768_s20, 4  ;;  %s3769_s22 = smov [#allocation2]   ;;  %s2685_s21 = int_to_ptr.vmem [resolvable:$true] %s2684_s21 }
   0x8   :  { %3351 = vmatpush3.bf16.msra.mxu1 %v3827_v7  ;;  %3375 = vmatpush3.bf16.msra.mxu0 %v3827_v7  ;;  %v3864_v16 = vpack.c.bf16 %v2714_v15, %v2713_v14  ;;  %v2716_v18 = vld [vmem:[%s4333_s1 + $0x58] sm:$0xff]  ;;  %v2717_v20 = vld [vmem:[%s4333_s1 + $0x60] sm:$0xff]  ;;  %v2718_v21 = vld [vmem:[%s4333_s1 + $0x68] sm:$0xff]  ;;  %s2674_s23 = sshll.u32 %s3769_s22, 4  ;;  %s3694_s24 = scalar_lea.vmem %s2685_s21, 128  ;;  %s2675_s23 = int_to_ptr.vmem [resolvable:$true] %s2674_s23 }
   0x9   :  { %3352 = vmatprep.subr.bf16.mxu1 %v3764_v3  ;;  %3382 = vmatprep.subr.bf16.mxu0 %v3764_v3  ;;  %v3875_v19 = vpack.c.bf16 %v2716_v18, %v2715_v17  ;;  %v3887_v22 = vpack.c.bf16 %v2718_v21, %v2717_v20  ;;  %v2719_v23 = vld [vmem:[%s4333_s1 + $0x70] sm:$0xff]  ;;  %v2720_v24 = vld [vmem:[%s4333_s1 + $0x78] sm:$0xff]  ;;  %v41_v26 = vld [vmem:[%s4332_s0] sm:$0xff]  ;;  %p3695_p0 = scmp.ne.s32.totalorder %s2685_s21, %s3694_s24  ;;  %p3699_p1 = scmp.lt.s32.totalorder %s2685_s21, %s2685_s21 }
   0xa   :  { %v3898_v25 = vpack.c.bf16 %v2720_v24, %v2719_v23  ;;  %v2722_v31 = vld [vmem:[%s4332_s0 + $0x40] sm:$0xff]  ;;  %v360_v60 = vld [vmem:[%s4332_s0 + $0x8] sm:$0xff]  ;;  %vm4252_vm2 = vmpackc.low %vm42_vm1, %vm42_vm1  ;;  %p3700_p2 = scmp.lt.s32.totalorder %s3694_s24, %s3694_s24 }
   0xb   :  { %2984 = vmatmul.mubr.f32.vlgmr.msra.gmra.mrb[0].mxu1 %v3766_v6  ;;  %v2724_v36 = vld [vmem:[%s4332_s0 + $0x80] sm:$0xff]  ;;  %v2729_v61 = vld [vmem:[%s4332_s0 + $0x48] sm:$0xff] }
   0xc   :  { %3354 = vmatpush3.bf16.msra.mxu1 %v3839_v10  ;;  %2994 = vmatprep.mubr.msk.f32.mxu1 %vm3765_vm0, %v3766_v6  ;;  %v2725_v42 = vld [vmem:[%s4332_s0 + $0xc0] sm:$0xff]  ;;  %v2734_v11 = vld [vmem:[%s4332_s0 + $0xc8] sm:$0xff]  ;;  %p3701_p3 = por %p3700_p2, %p3699_p1 }
   0xd   :  { %3355 = vmatprep.subr.bf16.mxu1 %v3764_v3  ;;  %v2732_v20 = vld [vmem:[%s4332_s0 + $0x88] sm:$0xff] }
   0xe   :  { %p3702_p4 = pnand %p3701_p3, %p3695_p0 }
  0x10   :  { %3357 = vmatpush3.bf16.msra.mxu1 %v3852_v13 }
  0x11   :  { %3358 = vmatprep.subr.bf16.mxu1 %v3764_v3 }
  0x13   :  { %2995 = vmatmul.mubr.f32.vlgmr.msra.gmra.mrb[2].mxu1 %v3766_v6 }
  0x14   :  { %3360 = vmatpush3.bf16.msra.mxu1 %v3864_v16  ;;  %3005 = vmatprep.mubr.msk.f32.mxu1 %vm3765_vm0, %v3766_v6 }
  0x15   :  { %3361 = vmatprep.subr.bf16.mxu1 %v3764_v3 }
  0x18   :  { %3363 = vmatpush3.bf16.msra.mxu1 %v3875_v19 }
  0x19   :  { %3364 = vmatprep.subr.bf16.mxu1 %v3764_v3 }
  0x1b   :  { %3006 = vmatmul.mubr.f32.vlgmr.msra.gmra.mrb[4].mxu1 %v3766_v6 }
  0x1c   :  { %3366 = vmatpush3.bf16.msra.mxu1 %v3887_v22  ;;  %3016 = vmatprep.mubr.msk.f32.mxu1 %vm3765_vm0, %v3766_v6 }
  0x1d   :  { %3367 = vmatprep.subr.bf16.mxu1 %v3764_v3 }
  0x20   :  { %3369 = vmatpush3.bf16.msra.mxu1 %v3898_v25 }
  0x21   :  { %3376 = vmatprep.subr.bf16.mxu1 %v3764_v3 }
  0x23   :  { %3017 = vmatmul.mubr.f32.vlgmr.msra.gmra.mrb[6].mxu1 %v3766_v6 }
  0x24   :  { %3378 = vmatpush3.bf16.msra.mxu1 %v3839_v10  ;;  %3038 = vmatprep.mubr.msk.f32.mxu1 %vm3765_vm0, %v3766_v6 }
  0x25   :  { %3379 = vmatprep.subr.bf16.mxu1 %v3764_v3 }
  0x28   :  { %3381 = vmatpush3.bf16.msra.mxu1 %v3852_v13 }
  0x29   :  { %3388 = vmatprep.subr.bf16.mxu1 %v3764_v3 }
  0xde   :  { %v112_v27 = vpop.f32.mrb[0].mxu1 }
  0xdf   :  { %v116_v28 = vadd.f32 %v112_v27, %v41_v26  ;;  %v2985_v29 = vpop.f32.mrb[1].mxu1 }
  0xe1   :  { %v2721_v30 = vmul.f32 -1.442695, %v116_v28 }
  0xe3   :  { %3562 = vpow2.f32 %v2721_v30 }
  0xe6   :  { %v191_v32 = vpop.f32.mrb[2].mxu1 }
  0xe7   :  { %v195_v33 = vadd.f32 %v2722_v31, %v191_v32  ;;  %v2996_v34 = vpop.f32.mrb[3].mxu1 }
  0xe9   :  { %v2723_v35 = vmul.f32 -1.442695, %v195_v33 }
  0xeb   :  { %3564 = vpow2.f32 %v2723_v35 }
  0xed   :  { %v3563_v37 = vpop.eup %3562 }
  0xee   :  { %v120_v38 = vadd.f32 1.0, %v3563_v37  ;;  %v270_v39 = vpop.f32.mrb[4].mxu1 }
  0xef   :  { %v274_v40 = vadd.f32 %v2724_v36, %v270_v39  ;;  %v3007_v41 = vpop.f32.mrb[5].mxu1 }
  0xf0   :  { %3566 = vrcp.f32 %v120_v38  ;;  %v2739_v41 = vld [vmem:[%s4332_s0 + $0x50] sm:$0xff] }
  0xf1   :  { %3568 = vtanh.f32 %v274_v40  ;;  %v675_v40 = vld [vmem:[%s4332_s0 + $0x10] sm:$0xff] }
  0xf5   :  { %v3565_v43 = vpop.eup %3564 }
  0xf6   :  { %v199_v44 = vadd.f32 1.0, %v3565_v43  ;;  %v344_v45 = vpop.f32.mrb[6].mxu1 }
  0xf7   :  { %v348_v46 = vadd.f32 %v2725_v42, %v344_v45  ;;  %v3018_v47 = vpop.f32.mrb[7].mxu1 }
  0xf8   :  { %3570 = vrcp.f32 %v199_v44 }
  0xf9   :  { %v2726_v48 = vmul.f32 -1.442695, %v348_v46 }
  0xfa   :  { %v3567_v49 = vpop.eup %3566 }
  0xfb   :  { %v3569_v50 = vpop.eup %3568  ;;  %3572 = vpow2.f32 %v2726_v48 }
  0xfc   :  { %v356_v51 = vmul.f32 %v3569_v50, %v3567_v49  ;;  %v2744_v50 = vld [vmem:[%s4332_s0 + $0xd0] sm:$0xff] }
 0x102   :  { %v3571_v52 = vpop.eup %3570 }
 0x103   :  { %v355_v53 = vmul.f32 0.0, %v3571_v52 }
 0x105   :  { %v3573_v54 = vpop.eup %3572  ;;  %v3924_v55 = vadd.f32 %v356_v51, %v355_v53 }
 0x106   :  { %v352_v56 = vadd.f32 1.0, %v3573_v54 }
 0x107   :  { %3574 = vtanh.f32 %v3924_v55 }
 0x108   :  { %3576 = vrcp.f32 %v352_v56  ;;  %v2742_v56 = vld [vmem:[%s4332_s0 + $0x90] sm:$0xff] }
 0x111   :  { %v3575_v57 = vpop.eup %3574 }
 0x112   :  { %v3577_v58 = vpop.eup %3576 }
 0x113   :  { %v3927_v59 = vmul.f32 %v3577_v58, %v3575_v57 }
 0x115   :  { %3028 = vmatmul.mubr.msk.f32.vlgmr.msra.gmra.mrb[0].mxu0 %vm42_vm1, %v3927_v59  ;;  %3039 = vmatmul.mubr.msk.f32.vlgmr.msra.gmra.mrb[8].mxu1 %vm42_vm1, %v3927_v59 }
 0x116   :  { %3384 = vmatpush3.bf16.msra.mxu0 %v3864_v16  ;;  %3390 = vmatpush3.bf16.msra.mxu1 %v3887_v22 }
 0x117   :  { %3385 = vmatprep.subr.bf16.mxu0 %v3764_v3  ;;  %3391 = vmatprep.subr.bf16.mxu1 %v3764_v3 }
 0x118   :  { %3049 = vmatprep.mubr.msk.f32.mxu0 %vm3765_vm0, %v3766_v6  ;;  %3060 = vmatprep.mubr.msk.f32.mxu1 %vm3765_vm0, %v3766_v6 }
 0x11a   :  { %3387 = vmatpush3.bf16.msra.mxu0 %v3875_v19  ;;  %3393 = vmatpush3.bf16.msra.mxu1 %v3898_v25 }
 0x11b   :  { %3394 = vmatprep.subr.bf16.mxu0 %v3764_v3  ;;  %3400 = vmatprep.subr.bf16.mxu1 %v3764_v3 }
 0x11d   :  { %3050 = vmatmul.mubr.msk.f32.vlgmr.msra.gmra.mrb[2].mxu0 %vm42_vm1, %v3927_v59  ;;  %3061 = vmatmul.mubr.msk.f32.vlgmr.msra.gmra.mrb[10].mxu1 %vm42_vm1, %v3927_v59 }
 0x11e   :  { %3396 = vmatpush3.bf16.msra.mxu0 %v3816_v4  ;;  %3402 = vmatpush3.bf16.msra.mxu1 %v3839_v10 }
 0x11f   :  { %3397 = vmatprep.subr.bf16.mxu0 %v3764_v3  ;;  %3403 = vmatprep.subr.bf16.mxu1 %v3764_v3 }
 0x120   :  { %3071 = vmatprep.mubr.msk.f32.mxu0 %vm3765_vm0, %v3766_v6  ;;  %3082 = vmatprep.mubr.msk.f32.mxu1 %vm3765_vm0, %v3766_v6 }
 0x122   :  { %3399 = vmatpush3.bf16.msra.mxu0 %v3827_v7  ;;  %3405 = vmatpush3.bf16.msra.mxu1 %v3852_v13 }
 0x123   :  { %3406 = vmatprep.subr.bf16.mxu0 %v3764_v3  ;;  %3412 = vmatprep.subr.bf16.mxu1 %v3764_v3 }
 0x1e8   :  { %v430_v62 = vpop.f32.mrb[0].mxu0  ;;  %v508_v63 = vpop.f32.mrb[8].mxu1 }
 0x1e9   :  { %v434_v0 = vadd.f32 %v430_v62, %v360_v60  ;;  %v512_v1 = vadd.f32 %v2729_v61, %v508_v63  ;;  %v3029_v2 = vpop.f32.mrb[1].mxu0  ;;  %v3040_v5 = vpop.f32.mrb[9].mxu1 }
 0x1eb   :  { %v2728_v8 = vmul.f32 -1.442695, %v434_v0  ;;  %v2731_v9 = vmul.f32 -1.442695, %v512_v1 }
 0x1ed   :  { %3578 = vpow2.f32 %v2728_v8 }
 0x1ee   :  { %3580 = vpow2.f32 %v2731_v9 }
 0x1f0   :  { %v586_v12 = vpop.f32.mrb[2].mxu0  ;;  %v659_v14 = vpop.f32.mrb[10].mxu1 }
 0x1f1   :  { %v663_v15 = vadd.f32 %v2734_v11, %v659_v14  ;;  %v3051_v17 = vpop.f32.mrb[3].mxu0  ;;  %v3062_v18 = vpop.f32.mrb[11].mxu1  ;;  %v590_v23 = vadd.f32 %v2732_v20, %v586_v12  ;;  %v2749_v20 = vld [vmem:[%s4332_s0 + $0x58] sm:$0xff] }
 0x1f2   :  { %v990_v18 = vld [vmem:[%s4332_s0 + $0x18] sm:$0xff] }
 0x1f3   :  { %v2736_v21 = vmul.f32 -1.442695, %v663_v15 }
 0x1f5   :  { %3582 = vpow2.f32 %v2736_v21 }
 0x1f6   :  { %3584 = vtanh.f32 %v590_v23 }
 0x1f7   :  { %v3579_v24 = vpop.eup %3578 }
 0x1f8   :  { %v3581_v26 = vpop.eup %3580  ;;  %v438_v27 = vadd.f32 1.0, %v3579_v24 }
 0x1f9   :  { %v516_v28 = vadd.f32 1.0, %v3581_v26 }
 0x1fa   :  { %3586 = vrcp.f32 %v438_v27 }
 0x1fb   :  { %3588 = vrcp.f32 %v516_v28 }
 0x1ff   :  { %v3583_v29 = vpop.eup %3582 }
 0x200   :  { %v3585_v30 = vpop.eup %3584  ;;  %v667_v34 = vadd.f32 1.0, %v3583_v29 }
 0x202   :  { %3590 = vrcp.f32 %v667_v34 }
 0x204   :  { %v3587_v31 = vpop.eup %3586 }
 0x205   :  { %v3589_v32 = vpop.eup %3588  ;;  %v671_v33 = vmul.f32 %v3587_v31, %v3585_v30  ;;  %v2754_v31 = vld [vmem:[%s4332_s0 + $0xd8] sm:$0xff] }
 0x206   :  { %v670_v35 = vmul.f32 %v3589_v32, %v3924_v55 }
 0x208   :  { %v3974_v36 = vadd.f32 %v671_v33, %v670_v35 }
 0x20a   :  { %3592 = vtanh.f32 %v3974_v36 }
 0x20c   :  { %v3591_v37 = vpop.eup %3590 }
 0x214   :  { %v3593_v38 = vpop.eup %3592 }
 0x215   :  { %v3977_v39 = vmul.f32 %v3593_v38, %v3591_v37  ;;  %v2752_v37 = vld [vmem:[%s4332_s0 + $0x98] sm:$0xff] }
 0x217   :  { %3072 = vmatmul.mubr.msk.f32.vlgmr.msra.gmra.mrb[4].mxu0 %vm42_vm1, %v3977_v39  ;;  %3083 = vmatmul.mubr.msk.f32.vlgmr.msra.gmra.mrb[12].mxu1 %vm42_vm1, %v3977_v39 }
 0x218   :  { %3408 = vmatpush3.bf16.msra.mxu0 %v3864_v16  ;;  %3414 = vmatpush3.bf16.msra.mxu1 %v3887_v22 }
 0x219   :  { %3409 = vmatprep.subr.bf16.mxu0 %v3764_v3  ;;  %3415 = vmatprep.subr.bf16.mxu1 %v3764_v3 }
 0x21a   :  { %3093 = vmatprep.mubr.msk.f32.mxu0 %vm3765_vm0, %v3766_v6  ;;  %3104 = vmatprep.mubr.msk.f32.mxu1 %vm3765_vm0, %v3766_v6 }
 0x21c   :  { %3411 = vmatpush3.bf16.msra.mxu0 %v3875_v19  ;;  %3417 = vmatpush3.bf16.msra.mxu1 %v3898_v25 }
 0x21d   :  { %3418 = vmatprep.subr.bf16.mxu0 %v3764_v3  ;;  %3424 = vmatprep.subr.bf16.mxu1 %v3764_v3 }
 0x21f   :  { %3094 = vmatmul.mubr.msk.f32.vlgmr.msra.gmra.mrb[6].mxu0 %vm42_vm1, %v3977_v39  ;;  %3105 = vmatmul.mubr.msk.f32.vlgmr.msra.gmra.mrb[14].mxu1 %vm42_vm1, %v3977_v39 }
 0x220   :  { %3420 = vmatpush3.bf16.msra.mxu0 %v3816_v4  ;;  %3426 = vmatpush3.bf16.msra.mxu1 %v3839_v10 }
 0x221   :  { %3421 = vmatprep.subr.bf16.mxu0 %v3764_v3  ;;  %3427 = vmatprep.subr.bf16.mxu1 %v3764_v3 }
 0x222   :  { %3115 = vmatprep.mubr.msk.f32.mxu0 %vm3765_vm0, %v3766_v6  ;;  %3126 = vmatprep.mubr.msk.f32.mxu1 %vm3765_vm0, %v3766_v6 }
 0x224   :  { %3423 = vmatpush3.bf16.msra.mxu0 %v3827_v7  ;;  %3429 = vmatpush3.bf16.msra.mxu1 %v3852_v13 }
 0x225   :  { %3430 = vmatprep.subr.bf16.mxu0 %v3764_v3  ;;  %3436 = vmatprep.subr.bf16.mxu1 %v3764_v3 }
 0x2ea   :  { %v745_v42 = vpop.f32.mrb[4].mxu0  ;;  %v823_v43 = vpop.f32.mrb[12].mxu1 }
 0x2eb   :  { %v749_v44 = vadd.f32 %v745_v42, %v675_v40  ;;  %v827_v45 = vadd.f32 %v2739_v41, %v823_v43  ;;  %v3073_v46 = vpop.f32.mrb[5].mxu0  ;;  %v3084_v47 = vpop.f32.mrb[13].mxu1 }
 0x2ed   :  { %v2738_v48 = vmul.f32 -1.442695, %v749_v44  ;;  %v2741_v49 = vmul.f32 -1.442695, %v827_v45 }
 0x2ef   :  { %3594 = vpow2.f32 %v2738_v48 }
 0x2f0   :  { %3596 = vpow2.f32 %v2741_v49 }
 0x2f2   :  { %v901_v51 = vpop.f32.mrb[6].mxu0  ;;  %v974_v52 = vpop.f32.mrb[14].mxu1 }
 0x2f3   :  { %v978_v53 = vadd.f32 %v2744_v50, %v974_v52  ;;  %v3095_v54 = vpop.f32.mrb[7].mxu0  ;;  %v3106_v55 = vpop.f32.mrb[15].mxu1  ;;  %v905_v58 = vadd.f32 %v2742_v56, %v901_v51  ;;  %v1305_v56 = vld [vmem:[%s4332_s0 + $0x20] sm:$0xff] }
 0x2f5   :  { %v2746_v57 = vmul.f32 -1.442695, %v978_v53 }
 0x2f7   :  { %3598 = vpow2.f32 %v2746_v57  ;;  %v2759_v57 = vld [vmem:[%s4332_s0 + $0x60] sm:$0xff] }
 0x2f8   :  { %3600 = vtanh.f32 %v905_v58 }
 0x2f9   :  { %v3595_v60 = vpop.eup %3594 }
 0x2fa   :  { %v3597_v61 = vpop.eup %3596  ;;  %v753_v62 = vadd.f32 1.0, %v3595_v60 }
 0x2fb   :  { %v831_v63 = vadd.f32 1.0, %v3597_v61 }
 0x2fc   :  { %3602 = vrcp.f32 %v753_v62 }
 0x2fd   :  { %3604 = vrcp.f32 %v831_v63 }
 0x301   :  { %v3599_v0 = vpop.eup %3598 }
 0x302   :  { %v3601_v1 = vpop.eup %3600  ;;  %v982_v9 = vadd.f32 1.0, %v3599_v0 }
 0x304   :  { %3606 = vrcp.f32 %v982_v9 }
 0x306   :  { %v3603_v2 = vpop.eup %3602 }
 0x307   :  { %v3605_v5 = vpop.eup %3604  ;;  %v986_v8 = vmul.f32 %v3603_v2, %v3601_v1 }
 0x308   :  { %v985_v11 = vmul.f32 %v3605_v5, %v3974_v36  ;;  %v2764_v5 = vld [vmem:[%s4332_s0 + $0xe0] sm:$0xff] }
 0x30a   :  { %v4024_v12 = vadd.f32 %v986_v8, %v985_v11 }
 0x30c   :  { %3608 = vtanh.f32 %v4024_v12 }
 0x30e   :  { %v3607_v14 = vpop.eup %3606 }
 0x316   :  { %v3609_v15 = vpop.eup %3608 }
 0x317   :  { %v4027_v17 = vmul.f32 %v3609_v15, %v3607_v14  ;;  %v2762_v15 = vld [vmem:[%s4332_s0 + $0xa0] sm:$0xff] }
 0x319   :  { %3116 = vmatmul.mubr.msk.f32.vlgmr.msra.gmra.mrb[8].mxu0 %vm42_vm1, %v4027_v17  ;;  %3127 = vmatmul.mubr.msk.f32.vlgmr.msra.gmra.mrb[16].mxu1 %vm42_vm1, %v4027_v17 }
 0x31a   :  { %3432 = vmatpush3.bf16.msra.mxu0 %v3864_v16  ;;  %3438 = vmatpush3.bf16.msra.mxu1 %v3887_v22 }
 0x31b   :  { %3433 = vmatprep.subr.bf16.mxu0 %v3764_v3  ;;  %3439 = vmatprep.subr.bf16.mxu1 %v3764_v3 }
 0x31c   :  { %3137 = vmatprep.mubr.msk.f32.mxu0 %vm3765_vm0, %v3766_v6  ;;  %3148 = vmatprep.mubr.msk.f32.mxu1 %vm3765_vm0, %v3766_v6 }
 0x31e   :  { %3435 = vmatpush3.bf16.msra.mxu0 %v3875_v19  ;;  %3441 = vmatpush3.bf16.msra.mxu1 %v3898_v25 }
 0x31f   :  { %3442 = vmatprep.subr.bf16.mxu0 %v3764_v3  ;;  %3448 = vmatprep.subr.bf16.mxu1 %v3764_v3 }
 0x321   :  { %3138 = vmatmul.mubr.msk.f32.vlgmr.msra.gmra.mrb[10].mxu0 %vm42_vm1, %v4027_v17  ;;  %3149 = vmatmul.mubr.msk.f32.vlgmr.msra.gmra.mrb[18].mxu1 %vm42_vm1, %v4027_v17 }
 0x322   :  { %3444 = vmatpush3.bf16.msra.mxu0 %v3816_v4  ;;  %3450 = vmatpush3.bf16.msra.mxu1 %v3839_v10 }
 0x323   :  { %3445 = vmatprep.subr.bf16.mxu0 %v3764_v3  ;;  %3451 = vmatprep.subr.bf16.mxu1 %v3764_v3 }
 0x324   :  { %3159 = vmatprep.mubr.msk.f32.mxu0 %vm3765_vm0, %v3766_v6  ;;  %3170 = vmatprep.mubr.msk.f32.mxu1 %vm3765_vm0, %v3766_v6 }
 0x326   :  { %3447 = vmatpush3.bf16.msra.mxu0 %v3827_v7  ;;  %3453 = vmatpush3.bf16.msra.mxu1 %v3852_v13 }
 0x327   :  { %3454 = vmatprep.subr.bf16.mxu0 %v3764_v3  ;;  %3460 = vmatprep.subr.bf16.mxu1 %v3764_v3 }
 0x3ec   :  { %v1060_v21 = vpop.f32.mrb[8].mxu0  ;;  %v1138_v23 = vpop.f32.mrb[16].mxu1 }
 0x3ed   :  { %v1064_v24 = vadd.f32 %v1060_v21, %v990_v18  ;;  %v1142_v26 = vadd.f32 %v2749_v20, %v1138_v23  ;;  %v3117_v27 = vpop.f32.mrb[9].mxu0  ;;  %v3128_v28 = vpop.f32.mrb[17].mxu1 }
 0x3ef   :  { %v2748_v29 = vmul.f32 -1.442695, %v1064_v24  ;;  %v2751_v30 = vmul.f32 -1.442695, %v1142_v26 }
 0x3f1   :  { %3610 = vpow2.f32 %v2748_v29 }
 0x3f2   :  { %3612 = vpow2.f32 %v2751_v30 }
 0x3f4   :  { %v1216_v32 = vpop.f32.mrb[10].mxu0  ;;  %v1289_v33 = vpop.f32.mrb[18].mxu1 }
 0x3f5   :  { %v1293_v34 = vadd.f32 %v2754_v31, %v1289_v33  ;;  %v3139_v35 = vpop.f32.mrb[11].mxu0  ;;  %v3150_v36 = vpop.f32.mrb[19].mxu1  ;;  %v1220_v40 = vadd.f32 %v2752_v37, %v1216_v32 }
 0x3f7   :  { %v2756_v38 = vmul.f32 -1.442695, %v1293_v34 }
 0x3f9   :  { %3614 = vpow2.f32 %v2756_v38  ;;  %v1620_v38 = vld [vmem:[%s4332_s0 + $0x28] sm:$0xff] }
 0x3fa   :  { %3616 = vtanh.f32 %v1220_v40  ;;  %v2769_v40 = vld [vmem:[%s4332_s0 + $0x68] sm:$0xff] }
 0x3fb   :  { %v3611_v41 = vpop.eup %3610 }
 0x3fc   :  { %v3613_v42 = vpop.eup %3612  ;;  %v1068_v43 = vadd.f32 1.0, %v3611_v41 }
 0x3fd   :  { %v1146_v44 = vadd.f32 1.0, %v3613_v42 }
 0x3fe   :  { %3618 = vrcp.f32 %v1068_v43 }
 0x3ff   :  { %3620 = vrcp.f32 %v1146_v44 }
 0x403   :  { %v3615_v45 = vpop.eup %3614 }
 0x404   :  { %v3617_v46 = vpop.eup %3616  ;;  %v1297_v50 = vadd.f32 1.0, %v3615_v45 }
 0x406   :  { %3622 = vrcp.f32 %v1297_v50 }
 0x408   :  { %v3619_v47 = vpop.eup %3618 }
 0x409   :  { %v3621_v48 = vpop.eup %3620  ;;  %v1301_v49 = vmul.f32 %v3619_v47, %v3617_v46 }
 0x40a   :  { %v1300_v51 = vmul.f32 %v3621_v48, %v4024_v12 }
 0x40c   :  { %v4074_v52 = vadd.f32 %v1301_v49, %v1300_v51  ;;  %v2774_v49 = vld [vmem:[%s4332_s0 + $0xe8] sm:$0xff] }
 0x40e   :  { %3624 = vtanh.f32 %v4074_v52 }
 0x410   :  { %v3623_v53 = vpop.eup %3622 }
 0x418   :  { %v3625_v54 = vpop.eup %3624 }
 0x419   :  { %v4077_v55 = vmul.f32 %v3625_v54, %v3623_v53 }
 0x41b   :  { %3160 = vmatmul.mubr.msk.f32.vlgmr.msra.gmra.mrb[12].mxu0 %vm42_vm1, %v4077_v55  ;;  %3171 = vmatmul.mubr.msk.f32.vlgmr.msra.gmra.mrb[20].mxu1 %vm42_vm1, %v4077_v55 }
 0x41c   :  { %3456 = vmatpush3.bf16.msra.mxu0 %v3864_v16  ;;  %3462 = vmatpush3.bf16.msra.mxu1 %v3887_v22 }
 0x41d   :  { %3457 = vmatprep.subr.bf16.mxu0 %v3764_v3  ;;  %3463 = vmatprep.subr.bf16.mxu1 %v3764_v3 }
 0x41e   :  { %3181 = vmatprep.mubr.msk.f32.mxu0 %vm3765_vm0, %v3766_v6  ;;  %3192 = vmatprep.mubr.msk.f32.mxu1 %vm3765_vm0, %v3766_v6 }
 0x420   :  { %3459 = vmatpush3.bf16.msra.mxu0 %v3875_v19  ;;  %3465 = vmatpush3.bf16.msra.mxu1 %v3898_v25 }
 0x421   :  { %3466 = vmatprep.subr.bf16.mxu0 %v3764_v3  ;;  %3472 = vmatprep.subr.bf16.mxu1 %v3764_v3 }
 0x423   :  { %3182 = vmatmul.mubr.msk.f32.vlgmr.msra.gmra.mrb[14].mxu0 %vm42_vm1, %v4077_v55  ;;  %3193 = vmatmul.mubr.msk.f32.vlgmr.msra.gmra.mrb[22].mxu1 %vm42_vm1, %v4077_v55 }
 0x424   :  { %3468 = vmatpush3.bf16.msra.mxu0 %v3816_v4  ;;  %3474 = vmatpush3.bf16.msra.mxu1 %v3839_v10 }
 0x425   :  { %3469 = vmatprep.subr.bf16.mxu0 %v3764_v3  ;;  %3475 = vmatprep.subr.bf16.mxu1 %v3764_v3 }
 0x426   :  { %3203 = vmatprep.mubr.msk.f32.mxu0 %vm3765_vm0, %v3766_v6  ;;  %3214 = vmatprep.mubr.msk.f32.mxu1 %vm3765_vm0, %v3766_v6 }
 0x428   :  { %3471 = vmatpush3.bf16.msra.mxu0 %v3827_v7  ;;  %3477 = vmatpush3.bf16.msra.mxu1 %v3852_v13 }
 0x429   :  { %3478 = vmatprep.subr.bf16.mxu0 %v3764_v3  ;;  %3484 = vmatprep.subr.bf16.mxu1 %v3764_v3 }
 0x4ee   :  { %v1375_v58 = vpop.f32.mrb[12].mxu0  ;;  %v1453_v60 = vpop.f32.mrb[20].mxu1 }
 0x4ef   :  { %v1379_v61 = vadd.f32 %v1375_v58, %v1305_v56  ;;  %v1457_v62 = vadd.f32 %v2759_v57, %v1453_v60  ;;  %v3161_v63 = vpop.f32.mrb[13].mxu0  ;;  %v3172_v0 = vpop.f32.mrb[21].mxu1  ;;  %v2772_v56 = vld [vmem:[%s4332_s0 + $0xa8] sm:$0xff] }
 0x4f1   :  { %v2758_v1 = vmul.f32 -1.442695, %v1379_v61  ;;  %v2761_v2 = vmul.f32 -1.442695, %v1457_v62 }
 0x4f3   :  { %3626 = vpow2.f32 %v2758_v1 }
 0x4f4   :  { %3628 = vpow2.f32 %v2761_v2 }
 0x4f6   :  { %v1531_v8 = vpop.f32.mrb[14].mxu0  ;;  %v1604_v9 = vpop.f32.mrb[22].mxu1 }
 0x4f7   :  { %v1608_v11 = vadd.f32 %v2764_v5, %v1604_v9  ;;  %v3183_v12 = vpop.f32.mrb[15].mxu0  ;;  %v3194_v14 = vpop.f32.mrb[23].mxu1  ;;  %v1535_v20 = vadd.f32 %v2762_v15, %v1531_v8 }
 0x4f9   :  { %v2766_v18 = vmul.f32 -1.442695, %v1608_v11 }
 0x4fb   :  { %3630 = vpow2.f32 %v2766_v18 }
 0x4fc   :  { %3632 = vtanh.f32 %v1535_v20 }
 0x4fd   :  { %v3627_v21 = vpop.eup %3626 }
 0x4fe   :  { %v3629_v23 = vpop.eup %3628  ;;  %v1383_v24 = vadd.f32 1.0, %v3627_v21 }
 0x4ff   :  { %v1461_v26 = vadd.f32 1.0, %v3629_v23 }
 0x500   :  { %3634 = vrcp.f32 %v1383_v24 }
 0x501   :  { %3636 = vrcp.f32 %v1461_v26 }
 0x505   :  { %v3631_v27 = vpop.eup %3630 }
 0x506   :  { %v3633_v28 = vpop.eup %3632  ;;  %v1612_v32 = vadd.f32 1.0, %v3631_v27 }
 0x508   :  { %3638 = vrcp.f32 %v1612_v32 }
 0x50a   :  { %v3635_v29 = vpop.eup %3634 }
 0x50b   :  { %v3637_v30 = vpop.eup %3636  ;;  %v1616_v31 = vmul.f32 %v3635_v29, %v3633_v28  ;;  %v2784_v28 = vld [vmem:[%s4332_s0 + $0xf0] sm:$0xff] }
 0x50c   :  { %v1615_v33 = vmul.f32 %v3637_v30, %v4074_v52 }
 0x50e   :  { %v4124_v34 = vadd.f32 %v1616_v31, %v1615_v33 }
 0x510   :  { %3640 = vtanh.f32 %v4124_v34 }
 0x512   :  { %v3639_v35 = vpop.eup %3638 }
 0x51a   :  { %v3641_v36 = vpop.eup %3640 }
 0x51b   :  { %v4127_v37 = vmul.f32 %v3641_v36, %v3639_v35 }
 0x51d   :  { %3204 = vmatmul.mubr.msk.f32.vlgmr.msra.gmra.mrb[16].mxu0 %vm42_vm1, %v4127_v37  ;;  %3215 = vmatmul.mubr.msk.f32.vlgmr.msra.gmra.mrb[24].mxu1 %vm42_vm1, %v4127_v37 }
 0x51e   :  { %3480 = vmatpush3.bf16.msra.mxu0 %v3864_v16  ;;  %3486 = vmatpush3.bf16.msra.mxu1 %v3887_v22 }
 0x51f   :  { %3481 = vmatprep.subr.bf16.mxu0 %v3764_v3  ;;  %3487 = vmatprep.subr.bf16.mxu1 %v3764_v3 }
 0x520   :  { %3225 = vmatprep.mubr.msk.f32.mxu0 %vm3765_vm0, %v3766_v6  ;;  %3236 = vmatprep.mubr.msk.f32.mxu1 %vm3765_vm0, %v3766_v6 }
 0x522   :  { %3483 = vmatpush3.bf16.msra.mxu0 %v3875_v19  ;;  %3489 = vmatpush3.bf16.msra.mxu1 %v3898_v25 }
 0x523   :  { %3490 = vmatprep.subr.bf16.mxu0 %v3764_v3  ;;  %3496 = vmatprep.subr.bf16.mxu1 %v3764_v3 }
 0x525   :  { %3226 = vmatmul.mubr.msk.f32.vlgmr.msra.gmra.mrb[18].mxu0 %vm42_vm1, %v4127_v37  ;;  %3237 = vmatmul.mubr.msk.f32.vlgmr.msra.gmra.mrb[26].mxu1 %vm42_vm1, %v4127_v37 }
 0x526   :  { %3492 = vmatpush3.bf16.msra.mxu0 %v3816_v4  ;;  %3498 = vmatpush3.bf16.msra.mxu1 %v3839_v10 }
 0x527   :  { %3493 = vmatprep.subr.bf16.mxu0 %v3764_v3  ;;  %3499 = vmatprep.subr.bf16.mxu1 %v3764_v3 }
 0x528   :  { %3247 = vmatprep.mubr.msk.f32.mxu0 %vm3765_vm0, %v3766_v6  ;;  %3258 = vmatprep.mubr.msk.f32.mxu1 %vm3765_vm0, %v3766_v6 }
 0x52a   :  { %3495 = vmatpush3.bf16.msra.mxu0 %v3827_v7  ;;  %3501 = vmatpush3.bf16.msra.mxu1 %v3852_v13 }
 0x52b   :  { %3502 = vmatprep.subr.bf16.mxu0 %v3764_v3  ;;  %3508 = vmatprep.subr.bf16.mxu1 %v3764_v3 }
 0x5f0   :  { %v1690_v41 = vpop.f32.mrb[16].mxu0  ;;  %v1768_v42 = vpop.f32.mrb[24].mxu1 }
 0x5f1   :  { %v1694_v43 = vadd.f32 %v1690_v41, %v1620_v38  ;;  %v1772_v44 = vadd.f32 %v2769_v40, %v1768_v42  ;;  %v3205_v45 = vpop.f32.mrb[17].mxu0  ;;  %v3216_v46 = vpop.f32.mrb[25].mxu1 }
 0x5f3   :  { %v2768_v47 = vmul.f32 -1.442695, %v1694_v43  ;;  %v2771_v48 = vmul.f32 -1.442695, %v1772_v44 }
 0x5f5   :  { %3642 = vpow2.f32 %v2768_v47 }
 0x5f6   :  { %3644 = vpow2.f32 %v2771_v48 }
 0x5f8   :  { %v1846_v50 = vpop.f32.mrb[18].mxu0  ;;  %v1919_v51 = vpop.f32.mrb[26].mxu1 }
 0x5f9   :  { %v1923_v52 = vadd.f32 %v2774_v49, %v1919_v51  ;;  %v3227_v53 = vpop.f32.mrb[19].mxu0  ;;  %v3238_v54 = vpop.f32.mrb[27].mxu1  ;;  %v1850_v58 = vadd.f32 %v2772_v56, %v1846_v50 }
 0x5fb   :  { %v2776_v57 = vmul.f32 -1.442695, %v1923_v52 }
 0x5fd   :  { %3646 = vpow2.f32 %v2776_v57 }
 0x5fe   :  { %3648 = vtanh.f32 %v1850_v58 }
 0x5ff   :  { %v3643_v60 = vpop.eup %3642 }
 0x600   :  { %v3645_v61 = vpop.eup %3644  ;;  %v1698_v62 = vadd.f32 1.0, %v3643_v60 }
 0x601   :  { %v1776_v63 = vadd.f32 1.0, %v3645_v61  ;;  %v2794_v61 = vld [vmem:[%s4332_s0 + $0xf8] sm:$0xff] }
 0x602   :  { %3650 = vrcp.f32 %v1698_v62 }
 0x603   :  { %3652 = vrcp.f32 %v1776_v63 }
 0x607   :  { %v3647_v0 = vpop.eup %3646 }
 0x608   :  { %v3649_v1 = vpop.eup %3648  ;;  %v1927_v9 = vadd.f32 1.0, %v3647_v0 }
 0x60a   :  { %3654 = vrcp.f32 %v1927_v9 }
 0x60c   :  { %v3651_v2 = vpop.eup %3650 }
 0x60d   :  { %v3653_v5 = vpop.eup %3652  ;;  %v1931_v8 = vmul.f32 %v3651_v2, %v3649_v1 }
 0x60e   :  { %v1930_v11 = vmul.f32 %v3653_v5, %v4124_v34  ;;  %v2782_v34 = vld [vmem:[%s4332_s0 + $0xb0] sm:$0xff]  ;;  %v2792_v5 = vld [vmem:[%s4332_s0 + $0xb8] sm:$0xff] }
 0x610   :  { %v4174_v12 = vadd.f32 %v1931_v8, %v1930_v11 }
 0x612   :  { %3656 = vtanh.f32 %v4174_v12 }
 0x614   :  { %v3655_v14 = vpop.eup %3654 }
 0x61c   :  { %v3657_v15 = vpop.eup %3656 }
 0x61d   :  { %v4177_v18 = vmul.f32 %v3657_v15, %v3655_v14 }
 0x61f   :  { %3248 = vmatmul.mubr.msk.f32.vlgmr.msra.gmra.mrb[20].mxu0 %vm42_vm1, %v4177_v18  ;;  %3259 = vmatmul.mubr.msk.f32.vlgmr.msra.gmra.mrb[28].mxu1 %vm42_vm1, %v4177_v18 }
 0x620   :  { %3504 = vmatpush3.bf16.msra.mxu0 %v3864_v16  ;;  %3510 = vmatpush3.bf16.msra.mxu1 %v3887_v22 }
 0x621   :  { %3505 = vmatprep.subr.bf16.mxu0 %v3764_v3  ;;  %3511 = vmatprep.subr.bf16.mxu1 %v3764_v3 }
 0x622   :  { %3269 = vmatprep.mubr.msk.f32.mxu0 %vm3765_vm0, %v3766_v6  ;;  %3280 = vmatprep.mubr.msk.f32.mxu1 %vm3765_vm0, %v3766_v6 }
 0x624   :  { %3507 = vmatpush3.bf16.msra.mxu0 %v3875_v19  ;;  %3513 = vmatpush3.bf16.msra.mxu1 %v3898_v25 }
 0x625   :  { %3514 = vmatprep.subr.bf16.mxu0 %v3764_v3  ;;  %3520 = vmatprep.subr.bf16.mxu1 %v3764_v3 }
 0x627   :  { %3270 = vmatmul.mubr.msk.f32.vlgmr.msra.gmra.mrb[22].mxu0 %vm42_vm1, %v4177_v18  ;;  %3281 = vmatmul.mubr.msk.f32.vlgmr.msra.gmra.mrb[30].mxu1 %vm42_vm1, %v4177_v18 }
 0x628   :  { %3516 = vmatpush3.bf16.msra.mxu0 %v3816_v4  ;;  %3522 = vmatpush3.bf16.msra.mxu1 %v3839_v10  ;;  %v1935_v4 = vld [vmem:[%s4332_s0 + $0x30] sm:$0xff] }
 0x629   :  { %3517 = vmatprep.subr.bf16.mxu0 %v3764_v3  ;;  %3523 = vmatprep.subr.bf16.mxu1 %v3764_v3  ;;  %v2779_v10 = vld [vmem:[%s4332_s0 + $0x70] sm:$0xff] }
 0x62a   :  { %3291 = vmatprep.mubr.msk.f32.mxu0 %vm3765_vm0, %v3766_v6  ;;  %3302 = vmatprep.mubr.msk.f32.mxu1 %vm3765_vm0, %v3766_v6 }
 0x62c   :  { %3519 = vmatpush3.bf16.msra.mxu0 %v3827_v7  ;;  %3525 = vmatpush3.bf16.msra.mxu1 %v3852_v13 }
 0x62d   :  { %3526 = vmatprep.subr.bf16.mxu0 %v3764_v3  ;;  %3532 = vmatprep.subr.bf16.mxu1 %v3764_v3 }
 0x6f2   :  { %v2005_v20 = vpop.f32.mrb[20].mxu0  ;;  %v2083_v21 = vpop.f32.mrb[28].mxu1 }
 0x6f3   :  { %v2009_v23 = vadd.f32 %v2005_v20, %v1935_v4  ;;  %v2087_v24 = vadd.f32 %v2779_v10, %v2083_v21  ;;  %v3249_v26 = vpop.f32.mrb[21].mxu0  ;;  %v3260_v7 = vpop.f32.mrb[29].mxu1 }
 0x6f5   :  { %v2778_v27 = vmul.f32 -1.442695, %v2009_v23  ;;  %v2781_v13 = vmul.f32 -1.442695, %v2087_v24 }
 0x6f7   :  { %3658 = vpow2.f32 %v2778_v27 }
 0x6f8   :  { %3660 = vpow2.f32 %v2781_v13 }
 0x6fa   :  { %v2161_v29 = vpop.f32.mrb[22].mxu0  ;;  %v2234_v30 = vpop.f32.mrb[30].mxu1 }
 0x6fb   :  { %v2238_v31 = vadd.f32 %v2784_v28, %v2234_v30  ;;  %v3271_v32 = vpop.f32.mrb[23].mxu0  ;;  %v3282_v33 = vpop.f32.mrb[31].mxu1  ;;  %v2165_v36 = vadd.f32 %v2782_v34, %v2161_v29  ;;  %v2567_v29 = vld [vmem:[%s4334_s2] sm:$0x3] }
 0x6fd   :  { %v2786_v35 = vmul.f32 -1.442695, %v2238_v31 }
 0x6ff   :  { %3662 = vpow2.f32 %v2786_v35 }
 0x700   :  { %3664 = vtanh.f32 %v2165_v36 }
 0x701   :  { %v3659_v38 = vpop.eup %3658 }
 0x702   :  { %v3661_v40 = vpop.eup %3660  ;;  %v2013_v41 = vadd.f32 1.0, %v3659_v38 }
 0x703   :  { %v2091_v42 = vadd.f32 1.0, %v3661_v40 }
 0x704   :  { %3666 = vrcp.f32 %v2013_v41 }
 0x705   :  { %3668 = vrcp.f32 %v2091_v42 }
 0x709   :  { %v3663_v43 = vpop.eup %3662 }
 0x70a   :  { %v3665_v44 = vpop.eup %3664  ;;  %v2242_v48 = vadd.f32 1.0, %v3663_v43 }
 0x70c   :  { %3670 = vrcp.f32 %v2242_v48 }
 0x70e   :  { %v3667_v45 = vpop.eup %3666 }
 0x70f   :  { %v3669_v46 = vpop.eup %3668  ;;  %v2246_v47 = vmul.f32 %v3667_v45, %v3665_v44 }
 0x710   :  { %v2245_v49 = vmul.f32 %v3669_v46, %v4174_v12 }
 0x712   :  { %v4224_v50 = vadd.f32 %v2246_v47, %v2245_v49 }
 0x714   :  { %3672 = vtanh.f32 %v4224_v50 }
 0x716   :  { %v3671_v51 = vpop.eup %3670 }
 0x71e   :  { %v3673_v52 = vpop.eup %3672 }
 0x71f   :  { %v4227_v53 = vmul.f32 %v3673_v52, %v3671_v51 }
 0x721   :  { %3292 = vmatmul.mubr.msk.f32.vlgmr.msra.gmra.mrb[24].mxu0 %vm42_vm1, %v4227_v53  ;;  %3303 = vmatmul.mubr.msk.f32.vlgmr.msra.gmra.mrb[32].mxu1 %vm42_vm1, %v4227_v53 }
 0x722   :  { %3528 = vmatpush3.bf16.msra.mxu0 %v3864_v16  ;;  %3534 = vmatpush3.bf16.msra.mxu1 %v3887_v22  ;;  %v3543_v22 = vpack.c.bf16 %v4077_v55, %v4027_v17  ;;  %v2789_v17 = vld [vmem:[%s4332_s0 + $0x78] sm:$0xff] }
 0x723   :  { %3529 = vmatprep.subr.bf16.mxu0 %v3764_v3  ;;  %3535 = vmatprep.subr.bf16.mxu1 %v3764_v3 }
 0x724   :  { %3313 = vmatprep.mubr.msk.f32.mxu0 %vm3765_vm0, %v3766_v6  ;;  %3324 = vmatprep.mubr.msk.f32.mxu1 %vm3765_vm0, %v3766_v6 }
 0x726   :  { %3531 = vmatpush3.bf16.msra.mxu0 %v3875_v19  ;;  %3537 = vmatpush3.bf16.msra.mxu1 %v3898_v25  ;;  %v3539_v19 = vpack.c.bf16 %v3977_v39, %v3927_v59  ;;  %v2568_v25 = vld [vmem:[%s4335_s3] sm:$0x3]  ;;  %v3767_v59 = vmov 0   ;;  %v2250_v39 = vld [vmem:[%s4332_s0 + $0x38] sm:$0xff] }
 0x727   :  { %3538 = vmatprep.subr.bf16.mxu0 %v3764_v3  ;;  %3561 = vset.pattern.permute.xlu0 %v3767_v59 }
 0x728   :  { %2571 = vperm.xlu0 %3561, %v2568_v25  }
 0x729   :  { %3314 = vmatmul.mubr.msk.f32.vlgmr.msra.gmra.mrb[26].mxu0 %vm42_vm1, %v4227_v53  ;;  %3325 = vmatmul.mubr.msk.f32.vlgmr.msra.gmra.mrb[34].mxu1 %vm42_vm1, %v4227_v53 }
 0x72a   :  { %3343 = vmatprep.mubr.msk.f32.mxu0 %vm3765_vm0, %v3766_v6  ;;  %v3547_v6 = vpack.c.bf16 %v4177_v18, %v4127_v37 }
 0x72f   :  { %3541 = vmatpush3.bf16.xpose.msk.msra.mxu0 %vm4252_vm2, %v3539_v19 }
 0x730   :  { %3542 = vmatprep.subr.bf16.mxu0 %v3764_v3 }
 0x737   :  { %3545 = vmatpush3.bf16.xpose.msk.msra.mxu0 %vm4252_vm2, %v3543_v22 }
 0x738   :  { %3546 = vmatprep.subr.bf16.mxu0 %v3764_v3 }
 0x73f   :  { %3549 = vmatpush3.bf16.xpose.msk.msra.mxu0 %vm4252_vm2, %v3547_v6 }
 0x740   :  { %3550 = vmatprep.subr.bf16.mxu0 %v3764_v3 }
 0x7f4   :  { %v2320_v55 = vpop.f32.mrb[24].mxu0  ;;  %v2398_v37 = vpop.f32.mrb[32].mxu1 }
 0x7f5   :  { %v2324_v54 = vadd.f32 %v2320_v55, %v2250_v39  ;;  %v2402_v56 = vadd.f32 %v2789_v17, %v2398_v37  ;;  %v3293_v3 = vpop.f32.mrb[25].mxu0  ;;  %v3304_v57 = vpop.f32.mrb[33].mxu1 }
 0x7f7   :  { %v2788_v58 = vmul.f32 -1.442695, %v2324_v54  ;;  %v2791_v60 = vmul.f32 -1.442695, %v2402_v56 }
 0x7f9   :  { %3674 = vpow2.f32 %v2788_v58 }
 0x7fa   :  { %3676 = vpow2.f32 %v2791_v60 }
 0x7fc   :  { %v2476_v62 = vpop.f32.mrb[26].mxu0  ;;  %v2549_v63 = vpop.f32.mrb[34].mxu1 }
 0x7fd   :  { %v2553_v0 = vadd.f32 %v2794_v61, %v2549_v63  ;;  %v3315_v1 = vpop.f32.mrb[27].mxu0  ;;  %v3326_v2 = vpop.f32.mrb[35].mxu1  ;;  %v2480_v9 = vadd.f32 %v2792_v5, %v2476_v62 }
 0x7ff   :  { %v2796_v8 = vmul.f32 -1.442695, %v2553_v0 }
 0x801   :  { %3678 = vpow2.f32 %v2796_v8 }
 0x802   :  { %3680 = vtanh.f32 %v2480_v9 }
 0x803   :  { %v3675_v11 = vpop.eup %3674 }
 0x804   :  { %v3677_v12 = vpop.eup %3676  ;;  %v2328_v14 = vadd.f32 1.0, %v3675_v11 }
 0x805   :  { %v2406_v15 = vadd.f32 1.0, %v3677_v12 }
 0x806   :  { %3682 = vrcp.f32 %v2328_v14 }
 0x807   :  { %3684 = vrcp.f32 %v2406_v15 }
 0x80b   :  { %v3679_v18 = vpop.eup %3678 }
 0x80c   :  { %v3681_v4 = vpop.eup %3680  ;;  %v2557_v23 = vadd.f32 1.0, %v3679_v18 }
 0x80e   :  { %3686 = vrcp.f32 %v2557_v23 }
 0x810   :  { %v3683_v10 = vpop.eup %3682 }
 0x811   :  { %v3685_v20 = vpop.eup %3684  ;;  %v2561_v21 = vmul.f32 %v3683_v10, %v3681_v4 }
 0x812   :  { %v2560_v24 = vmul.f32 %v3685_v20, %v4224_v50 }
 0x814   :  { %v2562_v26 = vadd.f32 %v2561_v21, %v2560_v24 }
 0x816   :  { %3688 = vtanh.f32 %v2562_v26  ;;  %2566 = vst.msk [vmem:[#allocation4] sm:$0xff] %vm42_vm1, %v2562_v26 }
 0x818   :  { %v3687_v7 = vpop.eup %3686 }
 0x820   :  { %v3689_v27 = vpop.eup %3688 }
 0x821   :  { %v2564_v13 = vmul.f32 %v3689_v27, %v3687_v7 }
 0x823   :  { %v3551_v28 = vpack.c.bf16 %v2564_v13, %v4227_v53  ;;  %2565 = vst.msk [vmem:[#allocation2] sm:$0xff] %vm42_vm1, %v2564_v13 }
 0x825   :  { %3553 = vmatpush3.bf16.xpose.msk.msra.mxu0 %vm4252_vm2, %v3551_v28 }
 0x82c   :  { %3344 = vmatmul.mubr.msk.f32.vlgmr.msra.gmra.mrb[28].mxu0 %vm42_vm1, %v2567_v29 }
 0x82d   :  { %3705 = shalt.err (!%p3702_p4)
}
 0x82e   :  { %s3706_s27 = scalar_lea.hbm %s4337_s5, 128 }
 0x82f   :  { %p3707_p5 = scmp.ne.s32.totalorder %s4337_s5, %s3706_s27  ;;  %p3710_p6 = scmp.lt.u32.totalorder %s3706_s27, %s4337_s5 }
 0x831   :  { %p3712_p7 = pnand %p3710_p6, %p3707_p5 }
 0x833   :  { %3715 = shalt.err (!%p3712_p7)
}
 0x834   :  { %2687 = dma.vmem_to_hbm [thread:$0]  %s2685_s21, 128, %s4337_s5, [#allocation5]  }
 0x835   :  { %s3716_s8 = scalar_lea.vmem %s2675_s23, 128  ;;  %p3721_p9 = scmp.lt.s32.totalorder %s2675_s23, %s2675_s23 }
 0x836   :  { %p3717_p8 = scmp.ne.s32.totalorder %s2675_s23, %s3716_s8  ;;  %p3722_p10 = scmp.lt.s32.totalorder %s3716_s8, %s3716_s8 }
 0x838   :  { %p3723_p11 = por %p3722_p10, %p3721_p9 }
 0x83a   :  { %p3724_p12 = pnand %p3723_p11, %p3717_p8 }
 0x83c   :  { %3727 = shalt.err (!%p3724_p12)
}
 0x83d   :  { %s3728_s11 = scalar_lea.hbm %s4336_s4, 128 }
 0x83e   :  { %p3729_p13 = scmp.ne.s32.totalorder %s4336_s4, %s3728_s11  ;;  %p3732_p0 = scmp.lt.u32.totalorder %s3728_s11, %s4336_s4 }
 0x840   :  { %p3734_p1 = pnand %p3732_p0, %p3729_p13 }
 0x842   :  { %3737 = shalt.err (!%p3734_p1)
}
 0x843   :  { %2677 = dma.vmem_to_hbm [thread:$0]  %s2675_s23, 128, %s4336_s4, [#allocation3]   ;;  %v2572_v30 = vpop.permute.xlu0 %2571  ;;  %vm2664_vm4 = vcmask 1040384   ;;  %vm2666_vm6 = vcmask 517120  }
 0x844   :  { %s3770_s16 = smov [#allocation6]  }
 0x845   :  { %s2694_s17 = sshll.u32 %s3770_s16, 4  ;;  %s2695_s17 = int_to_ptr.vmem [resolvable:$true] %s2694_s17 }
 0x846   :  { %s3738_s4 = scalar_lea.vmem %s2695_s17, 32  ;;  %p3743_p3 = scmp.lt.s32.totalorder %s2695_s17, %s2695_s17 }
 0x847   :  { %p3739_p2 = scmp.ne.s32.totalorder %s2695_s17, %s3738_s4  ;;  %p3744_p4 = scmp.lt.s32.totalorder %s3738_s4, %s3738_s4 }
 0x849   :  { %p3745_p5 = por %p3744_p4, %p3743_p3 }
 0x84b   :  { %p3746_p6 = pnand %p3745_p5, %p3739_p2 }
 0x8ff   :  { %v2646_v31 = vpop.f32.mrb[28].mxu0 }
 0x900   :  { %v2647_v32 = vadd.f32 %v2646_v31, %v2572_v30  ;;  %v3345_v33 = vpop.f32.mrb[29].mxu0 }
 0x902   :  { %v2651_v34 = vmin.f32 %v2647_v32, 20.0  ;;  %vm2650_vm5 = vcmp.gt.f32.partialorder %v2647_v32, 20.0 }
 0x904   :  { %v2652_v35 = vmul.f32 1.442695, %v2651_v34 }
 0x906   :  { %3690 = vpow2.f32 %v2652_v35 }
 0x910   :  { %v3691_v36 = vpop.eup %3690 }
 0x911   :  { %v2654_v38 = vadd.f32 1.0, %v3691_v36  ;;  %v2657_v40 = vmul.f32 -0.5, %v3691_v36  ;;  %v2660_v42 = vand.u32 2147483647, %v3691_v36 }
 0x913   :  { %3692 = vlog2.f32 %v2654_v38  ;;  %v2658_v41 = vadd.f32 1.0, %v2657_v40  ;;  %vm2661_vm3 = vcmp.lt.f32.partialorder %v2660_v42, 0.0004427343 }
 0x915   :  { %v2659_v45 = vmul.f32 %v3691_v36, %v2658_v41 }
 0x91d   :  { %v3693_v43 = vpop.eup %3692 }
 0x91e   :  { %v2656_v44 = vmul.f32 0.6931472, %v3693_v43 }
 0x920   :  { %v2662_v46 = vsel %vm2661_vm3, %v2659_v45, %v2656_v44 }
 0x921   :  { %v2663_v47 = vsel %vm2650_vm5, %v2647_v32, %v2662_v46 }
 0x922   :  { %v2665_v48 = vsel %vm2664_vm4, %v2647_v32, %v2663_v47 }
 0x923   :  { %2667 = vst.msk [vmem:[#allocation6] sm:$0x3] %vm2666_vm6, %v2665_v48 }
 0x924   :  { %3749 = shalt.err (!%p3746_p6)
}
 0x925   :  { %s3750_s19 = scalar_lea.hbm %s4338_s6, 32 }
 0x926   :  { %p3751_p7 = scmp.ne.s32.totalorder %s4338_s6, %s3750_s19  ;;  %p3754_p8 = scmp.lt.u32.totalorder %s3750_s19, %s4338_s6 }
 0x928   :  { %p3756_p9 = pnand %p3754_p8, %p3751_p7 }
 0x92a   :  { %3759 = shalt.err (!%p3756_p9)
}
 0x92b   :  { %2697 = dma.vmem_to_hbm [thread:$0]  %s2695_s17, 32, %s4338_s6, [#allocation5]  }
 0x92c   :  { %3760 = dma.done.wait [#allocation3], 128  }
 0x92d   :  { %3761 = vsyncadd [#allocation3], 4294967168 }
 0x92e   :  { %3762 = dma.done.wait [#allocation5], 160  }
 0x92f   :  { %3763 = vsyncadd [#allocation5], 4294967136 }
 0x930   :  { %2707 = vsyncpa [#allocation3], 1 }
 0x931   :  { %2708 = vsyncpa [#allocation5], 1 }

</bundles_post_ra>
